<compile_context>
chip_gen: v7x
topology: tpu7x:2x2x1
jax: 0.10.0
libtpu: 0.0.40
codegen_flags: <defaults>
</compile_context>

<pallas_src>
import functools

import numpy as np
import jax
import jax.numpy as jnp
from jax import lax
from jax.experimental import pallas as pl
from jax.experimental.pallas import tpu as pltpu


def freqcnn_kernel(x_ref, dr_ref, di_ref, a2_ref, g_ref, kr_ref, ki_ref, b_ref,
                   out_ref, *, f_pad, kh):
    # Per-grid-step shapes:
    #   x_ref   : (tb, N, D) f32       dr_ref / di_ref : (tb, 1, D) f32
    #   a2_ref  : (2*f_pad, N) mxu     g_ref           : (N, f_pad) mxu
    #   kr_ref  : (kh, D, D) mxu       ki_ref          : (kh, D, D) mxu
    #   b_ref   : (1,) f32 in SMEM     out_ref         : (tb, N, D) f32
    tb = x_ref.shape[0]
    ph = kh // 2
    mxu_dtype = a2_ref.dtype

    a2 = a2_ref[...]                # stacked [real; imag] ortho-rfft matrix
    g = g_ref[...]                  # ortho-irfft matrix (padded cols are zero)
    bias = b_ref[0]

    for b in range(tb):             # static unroll over the batch elements of the tile
        xb = x_ref[b].astype(mxu_dtype)                                    # (N, D)
        # Fused rfft (real & imag halves stacked) as one exact ortho-DFT matmul.
        x2 = jnp.dot(a2, xb, preferred_element_type=jnp.float32)          # (2*f_pad, D)

        # einsum('bnd,bdd->bnd') with a repeated index == per-batch diagonal scale; +ReLU.
        yr = jnp.maximum(x2[:f_pad] * dr_ref[b], 0.0)                     # (f_pad, D) f32
        yi = jnp.maximum(x2[f_pad:] * di_ref[b], 0.0)                     # (f_pad, D) f32
        yr_m = yr.astype(mxu_dtype)
        yi_m = yi.astype(mxu_dtype)

        # 2-channel kh x kw "same" conv:
        #   - the kw column (embed-dim) taps are folded into shared (D, D) tap matrices
        #     (one per row tap & channel); two accumulating dots per row tap,
        #   - the kh row (frequency) taps are cyclic sublane rolls, which equal the
        #     zero-padded shifts because rows F..f_pad-1 are exactly zero and
        #     f_pad >= F + kh//2.
        acc = None
        for i in range(kh):
            t_i = (jnp.dot(yr_m, kr_ref[i], preferred_element_type=jnp.float32)
                   + jnp.dot(yi_m, ki_ref[i], preferred_element_type=jnp.float32))
            sh = (ph - i) % f_pad
            if sh:
                t_i = pltpu.roll(t_i, sh, axis=0)
            acc = t_i if acc is None else acc + t_i
        z = acc + bias                                                     # (f_pad, D) f32

        # irfft(n=N, norm='ortho') back to the sequence axis (exact inverse-DFT matmul).
        out_ref[b] = jnp.dot(g, z.astype(mxu_dtype),
                             preferred_element_type=jnp.float32)           # (N, D) f32


def make_constants(N, D, conv_w, *, dtype):
    """DFT / inverse-DFT matrices (zero-padded on the frequency axis) and the shared
    per-row-tap conv matrices.  conv_w must be concrete (module constants)."""
    conv_w = np.asarray(conv_w, np.float32)                  # (1, 2, kh, kw)
    kh, kw = conv_w.shape[2], conv_w.shape[3]
    ph, pw = kh // 2, kw // 2
    F = N // 2 + 1
    # Reserve at least kh//2 guaranteed-zero rows above F so cyclic roll == zero-pad.
    f_pad = -(-(F + ph) // 8) * 8

    # ortho rfft as a dense matrix, padded to f_pad rows; real & imag stacked.
    R = np.fft.rfft(np.eye(N), axis=-1, norm='ortho')        # (N, F) complex
    A2 = np.zeros((2 * f_pad, N), np.float32)
    A2[:F] = R.real.T
    A2[f_pad:f_pad + F] = R.imag.T

    # ortho irfft as a dense matrix, padded to f_pad columns (padded cols are zero).
    M = np.fft.irfft(np.eye(F), n=N, axis=-1, norm='ortho')  # (F, N) real
    G = np.zeros((N, f_pad), np.float32)
    G[:, :F] = M.T

    # Shared (not batch-block-diagonal) column-tap matrices: for row tap i and channel c,
    # K[c][i][d', d] = sum_j w[c,i,j] * [d' == d + j - pw]  (zero-padded at the D edges).
    E = np.stack([np.eye(D, k=pw - j) for j in range(kw)]).astype(np.float32)  # (kw, D, D)
    Kr = np.stack([sum(conv_w[0, 0, i, j] * E[j] for j in range(kw)) for i in range(kh)])
    Ki = np.stack([sum(conv_w[0, 1, i, j] * E[j] for j in range(kw)) for i in range(kh)])

    return (jnp.asarray(A2, dtype), jnp.asarray(G, dtype),
            jnp.asarray(Kr, dtype), jnp.asarray(Ki, dtype), f_pad)


def freqcnn_pallas(x, wr_full, wi_full, conv_w, conv_b, *, tb=8, use_bf16=True):
    B, N, D = x.shape
    kh = conv_w.shape[2]
    mxu_dtype = jnp.bfloat16 if use_bf16 else jnp.float32
    A2, G, Kr, Ki, f_pad = make_constants(N, D, conv_w, dtype=mxu_dtype)

    # Only the diagonals of the generated weights matter (repeated index in the einsum).
    diag_r = jnp.diagonal(wr_full, axis1=1, axis2=2)[:, None, :].astype(jnp.float32)
    diag_i = jnp.diagonal(wi_full, axis1=1, axis2=2)[:, None, :].astype(jnp.float32)

    # Pad batch to a multiple of tb (padded elements are trimmed after the kernel).
    tb = max(1, min(tb, B))
    Bp = -(-B // tb) * tb
    if Bp != B:
        p = Bp - B
        x = jnp.pad(x, ((0, p), (0, 0), (0, 0)))
        diag_r = jnp.pad(diag_r, ((0, p), (0, 0), (0, 0)))
        diag_i = jnp.pad(diag_i, ((0, p), (0, 0), (0, 0)))
    steps = Bp // tb

    bias = jnp.reshape(conv_b, (1,)).astype(jnp.float32)
    kernel = functools.partial(freqcnn_kernel, f_pad=f_pad, kh=kh)

    out = pl.pallas_call(
        kernel,
        out_shape=jax.ShapeDtypeStruct((Bp, N, D), jnp.float32),
        grid_spec=pl.GridSpec(
            grid=(steps,),
            in_specs=[
                pl.BlockSpec((tb, N, D), lambda g: (g, 0, 0)),       # x tile (single HBM pass)
                pl.BlockSpec((tb, 1, D), lambda g: (g, 0, 0)),       # diag(weight_real)
                pl.BlockSpec((tb, 1, D), lambda g: (g, 0, 0)),       # diag(weight_imag)
                pl.BlockSpec(A2.shape, lambda g: (0, 0)),            # stacked rfft matrix
                pl.BlockSpec(G.shape, lambda g: (0, 0)),             # irfft matrix
                pl.BlockSpec(Kr.shape, lambda g: (0, 0, 0)),         # real-channel conv taps
                pl.BlockSpec(Ki.shape, lambda g: (0, 0, 0)),         # imag-channel conv taps
                pl.BlockSpec(memory_space=pltpu.MemorySpace.SMEM),   # conv bias (1,)
            ],
            out_specs=pl.BlockSpec((tb, N, D), lambda g: (g, 0, 0)),  # native (B, N, D) layout
        ),
        compiler_params=pltpu.CompilerParams(dimension_semantics=("parallel",)),
    )(x, diag_r, diag_i, A2, G, Kr, Ki, bias)
    return out[:B]


def reference_forward(x, wr_full, wi_full, conv_w, conv_b):
    """Pure-JAX reference reproducing the (shape-consistent) PyTorch forward."""
    B, N, D = x.shape
    xf = jnp.fft.rfft(x, axis=1, norm='ortho')
    yr = jax.nn.relu(jnp.einsum('bnd,bdd->bnd', xf.real, wr_full))
    yi = jax.nn.relu(jnp.einsum('bnd,bdd->bnd', xf.imag, wi_full))
    stacked = jnp.stack([yr, yi], axis=1)                               # (B, 2, F, D)
    kh, kw = conv_w.shape[2], conv_w.shape[3]
    z = lax.conv_general_dilated(
        stacked, conv_w, (1, 1),
        ((kh // 2, kh // 2), (kw // 2, kw // 2)),
        dimension_numbers=('NCHW', 'OIHW', 'NCHW'))                     # (B, 1, F, D)
    z = z[:, 0] + conv_b
    return jnp.fft.irfft(z, n=N, axis=1, norm='ortho')


if __name__ == "__main__":
    B, N, D = 16, 16, 32         # batch, sequence length, embed_size
    KH, KW = 3, 3
    TB = 8                       # batch elements per grid step -> 2 steps (both v7x TCs)

    key = jax.random.PRNGKey(0)
    k1, k2, k3, k4 = jax.random.split(key, 4)
    x = jax.random.normal(k1, (B, N, D), jnp.float32)

    # Deterministic stand-in weight_generator: simple linear map x -> (B, D, D) pair.
    Pr = 0.1 * jax.random.normal(k2, (D, D * D), jnp.float32)
    Pi = 0.1 * jax.random.normal(k3, (D, D * D), jnp.float32)
    pooled = x.mean(axis=1)                                             # (B, D)
    wr_full = jnp.tanh(pooled @ Pr).reshape(B, D, D)
    wi_full = jnp.tanh(pooled @ Pi).reshape(B, D, D)

    # Deterministic conv parameters (out=1, in=2, kh, kw) + scalar bias.
    conv_w = 0.2 * jax.random.normal(k4, (1, 2, KH, KW), jnp.float32)
    conv_b = jnp.asarray([0.05], jnp.float32)

    ref = reference_forward(x, wr_full, wi_full, conv_w, conv_b[0])

    # f32 MXU path: proves the algorithm is exact.
    out_f32 = jax.block_until_ready(
        freqcnn_pallas(x, wr_full, wi_full, conv_w, conv_b, tb=TB, use_bf16=False))
    np.testing.assert_allclose(np.asarray(out_f32), np.asarray(ref), rtol=1e-3, atol=1e-3)

    # bf16 MXU operands with f32 accumulation (recommended perf mode on v5e/v6e/v7x).
    out_bf16 = jax.block_until_ready(
        freqcnn_pallas(x, wr_full, wi_full, conv_w, conv_b, tb=TB, use_bf16=True))
    np.testing.assert_allclose(np.asarray(out_bf16), np.asarray(ref), rtol=2e-2, atol=2e-2)

    print("KERNEL_OK")
</pallas_src>

<mosaic_0001>
module attributes {stable_mosaic.version = 11 : i64} {
  func.func @freqcnn_kernel(%arg0: i32, %arg1: memref<8x16x32xf32, #tpu.memory_space<vmem>>, %arg2: memref<8x1x32xf32, #tpu.memory_space<vmem>>, %arg3: memref<8x1x32xf32, #tpu.memory_space<vmem>>, %arg4: memref<32x16xf32, #tpu.memory_space<vmem>>, %arg5: memref<16x16xf32, #tpu.memory_space<vmem>>, %arg6: memref<3x32x32xf32, #tpu.memory_space<vmem>>, %arg7: memref<3x32x32xf32, #tpu.memory_space<vmem>>, %arg8: memref<1xf32, #tpu.memory_space<smem>>, %arg9: memref<8x16x32xf32, #tpu.memory_space<vmem>>) attributes {dimension_semantics = [#tpu.dimension_semantics<parallel>], iteration_bounds = array<i64: 2>, scalar_prefetch = 0 : i64, scratch_operands = 0 : i64, tpu.core_type = #tpu.core_type<tc>, window_params = [{transform_indices = @transform_0, window_bounds = array<i64: 8, 16, 32>}, {transform_indices = @transform_1, window_bounds = array<i64: 8, 1, 32>}, {transform_indices = @transform_2, window_bounds = array<i64: 8, 1, 32>}, {pipeline_mode = #tpu.pipeline_mode<synchronous>, transform_indices = @transform_3, window_bounds = array<i64: 32, 16>}, {pipeline_mode = #tpu.pipeline_mode<synchronous>, transform_indices = @transform_4, window_bounds = array<i64: 16, 16>}, {pipeline_mode = #tpu.pipeline_mode<synchronous>, transform_indices = @transform_5, window_bounds = array<i64: 3, 32, 32>}, {pipeline_mode = #tpu.pipeline_mode<synchronous>, transform_indices = @transform_6, window_bounds = array<i64: 3, 32, 32>}, {transform_indices = @transform_7, window_bounds = array<i64: 1>}, {transform_indices = @transform_8, window_bounds = array<i64: 8, 16, 32>}]} {
    %c0 = arith.constant 0 : index
    %c0_0 = arith.constant 0 : index
    %0 = vector.load %arg4[%c0, %c0_0] : memref<32x16xf32, #tpu.memory_space<vmem>>, vector<32x16xf32>
    %c0_1 = arith.constant 0 : index
    %c0_2 = arith.constant 0 : index
    %1 = vector.load %arg5[%c0_1, %c0_2] : memref<16x16xf32, #tpu.memory_space<vmem>>, vector<16x16xf32>
    %c0_3 = arith.constant 0 : index
    %2 = memref.load %arg8[%c0_3] : memref<1xf32, #tpu.memory_space<smem>>
    %c0_4 = arith.constant 0 : index
    %c0_5 = arith.constant 0 : index
    %c0_6 = arith.constant 0 : index
    %3 = vector.load %arg1[%c0_4, %c0_5, %c0_6] : memref<8x16x32xf32, #tpu.memory_space<vmem>>, vector<1x16x32xf32>
    %4 = vector.shape_cast %3 : vector<1x16x32xf32> to vector<16x32xf32>
    %cst = arith.constant dense<0.000000e+00> : vector<32x32xf32>
    %5 = tpu.matmul %0, %4, %cst {dimension_numbers = #tpu.dot_dimension_numbers<[1], [0], [0], [1], [0, 0, 1, 1], [], []>} : vector<32x16xf32>, vector<16x32xf32>, vector<32x32xf32> -> vector<32x32xf32>
    %6 = vector.extract_strided_slice %5 {offsets = [0, 0], sizes = [16, 32], strides = [1, 1]} : vector<32x32xf32> to vector<16x32xf32>
    %c0_7 = arith.constant 0 : index
    %c0_8 = arith.constant 0 : index
    %c0_9 = arith.constant 0 : index
    %7 = vector.load %arg2[%c0_7, %c0_8, %c0_9] : memref<8x1x32xf32, #tpu.memory_space<vmem>>, vector<1x1x32xf32>
    %8 = vector.shape_cast %7 : vector<1x1x32xf32> to vector<1x32xf32>
    %9 = vector.broadcast %8 : vector<1x32xf32> to vector<16x32xf32>
    %10 = arith.mulf %6, %9 : vector<16x32xf32>
    %cst_10 = arith.constant 0.000000e+00 : f32
    %11 = vector.broadcast %cst_10 : f32 to vector<16x32xf32>
    %12 = arith.maximumf %10, %11 : vector<16x32xf32>
    %13 = vector.extract_strided_slice %5 {offsets = [16, 0], sizes = [16, 32], strides = [1, 1]} : vector<32x32xf32> to vector<16x32xf32>
    %c0_11 = arith.constant 0 : index
    %c0_12 = arith.constant 0 : index
    %c0_13 = arith.constant 0 : index
    %14 = vector.load %arg3[%c0_11, %c0_12, %c0_13] : memref<8x1x32xf32, #tpu.memory_space<vmem>>, vector<1x1x32xf32>
    %15 = vector.shape_cast %14 : vector<1x1x32xf32> to vector<1x32xf32>
    %16 = vector.broadcast %15 : vector<1x32xf32> to vector<16x32xf32>
    %17 = arith.mulf %13, %16 : vector<16x32xf32>
    %cst_14 = arith.constant 0.000000e+00 : f32
    %18 = vector.broadcast %cst_14 : f32 to vector<16x32xf32>
    %19 = arith.maximumf %17, %18 : vector<16x32xf32>
    %c0_15 = arith.constant 0 : index
    %c0_16 = arith.constant 0 : index
    %c0_17 = arith.constant 0 : index
    %20 = vector.load %arg6[%c0_15, %c0_16, %c0_17] : memref<3x32x32xf32, #tpu.memory_space<vmem>>, vector<1x32x32xf32>
    %21 = vector.shape_cast %20 : vector<1x32x32xf32> to vector<32x32xf32>
    %cst_18 = arith.constant dense<0.000000e+00> : vector<16x32xf32>
    %22 = tpu.matmul %12, %21, %cst_18 {dimension_numbers = #tpu.dot_dimension_numbers<[1], [0], [0], [1], [0, 0, 1, 1], [], []>} : vector<16x32xf32>, vector<32x32xf32>, vector<16x32xf32> -> vector<16x32xf32>
    %c0_19 = arith.constant 0 : index
    %c0_20 = arith.constant 0 : index
    %c0_21 = arith.constant 0 : index
    %23 = vector.load %arg7[%c0_19, %c0_20, %c0_21] : memref<3x32x32xf32, #tpu.memory_space<vmem>>, vector<1x32x32xf32>
    %24 = vector.shape_cast %23 : vector<1x32x32xf32> to vector<32x32xf32>
    %cst_22 = arith.constant dense<0.000000e+00> : vector<16x32xf32>
    %25 = tpu.matmul %19, %24, %cst_22 {dimension_numbers = #tpu.dot_dimension_numbers<[1], [0], [0], [1], [0, 0, 1, 1], [], []>} : vector<16x32xf32>, vector<32x32xf32>, vector<16x32xf32> -> vector<16x32xf32>
    %26 = arith.addf %22, %25 : vector<16x32xf32>
    %c1_i32 = arith.constant 1 : i32
    %27 = tpu.dynamic_rotate %26 by %c1_i32 dim 0 : vector<16x32xf32>, i32 -> vector<16x32xf32>
    %c1 = arith.constant 1 : index
    %c0_23 = arith.constant 0 : index
    %c0_24 = arith.constant 0 : index
    %28 = vector.load %arg6[%c1, %c0_23, %c0_24] : memref<3x32x32xf32, #tpu.memory_space<vmem>>, vector<1x32x32xf32>
    %29 = vector.shape_cast %28 : vector<1x32x32xf32> to vector<32x32xf32>
    %cst_25 = arith.constant dense<0.000000e+00> : vector<16x32xf32>
    %30 = tpu.matmul %12, %29, %cst_25 {dimension_numbers = #tpu.dot_dimension_numbers<[1], [0], [0], [1], [0, 0, 1, 1], [], []>} : vector<16x32xf32>, vector<32x32xf32>, vector<16x32xf32> -> vector<16x32xf32>
    %c1_26 = arith.constant 1 : index
    %c0_27 = arith.constant 0 : index
    %c0_28 = arith.constant 0 : index
    %31 = vector.load %arg7[%c1_26, %c0_27, %c0_28] : memref<3x32x32xf32, #tpu.memory_space<vmem>>, vector<1x32x32xf32>
    %32 = vector.shape_cast %31 : vector<1x32x32xf32> to vector<32x32xf32>
    %cst_29 = arith.constant dense<0.000000e+00> : vector<16x32xf32>
    %33 = tpu.matmul %19, %32, %cst_29 {dimension_numbers = #tpu.dot_dimension_numbers<[1], [0], [0], [1], [0, 0, 1, 1], [], []>} : vector<16x32xf32>, vector<32x32xf32>, vector<16x32xf32> -> vector<16x32xf32>
    %34 = arith.addf %30, %33 : vector<16x32xf32>
    %35 = arith.addf %27, %34 : vector<16x32xf32>
    %c2 = arith.constant 2 : index
    %c0_30 = arith.constant 0 : index
    %c0_31 = arith.constant 0 : index
    %36 = vector.load %arg6[%c2, %c0_30, %c0_31] : memref<3x32x32xf32, #tpu.memory_space<vmem>>, vector<1x32x32xf32>
    %37 = vector.shape_cast %36 : vector<1x32x32xf32> to vector<32x32xf32>
    %cst_32 = arith.constant dense<0.000000e+00> : vector<16x32xf32>
    %38 = tpu.matmul %12, %37, %cst_32 {dimension_numbers = #tpu.dot_dimension_numbers<[1], [0], [0], [1], [0, 0, 1, 1], [], []>} : vector<16x32xf32>, vector<32x32xf32>, vector<16x32xf32> -> vector<16x32xf32>
    %c2_33 = arith.constant 2 : index
    %c0_34 = arith.constant 0 : index
    %c0_35 = arith.constant 0 : index
    %39 = vector.load %arg7[%c2_33, %c0_34, %c0_35] : memref<3x32x32xf32, #tpu.memory_space<vmem>>, vector<1x32x32xf32>
    %40 = vector.shape_cast %39 : vector<1x32x32xf32> to vector<32x32xf32>
    %cst_36 = arith.constant dense<0.000000e+00> : vector<16x32xf32>
    %41 = tpu.matmul %19, %40, %cst_36 {dimension_numbers = #tpu.dot_dimension_numbers<[1], [0], [0], [1], [0, 0, 1, 1], [], []>} : vector<16x32xf32>, vector<32x32xf32>, vector<16x32xf32> -> vector<16x32xf32>
    %42 = arith.addf %38, %41 : vector<16x32xf32>
    %c15_i32 = arith.constant 15 : i32
    %43 = tpu.dynamic_rotate %42 by %c15_i32 dim 0 : vector<16x32xf32>, i32 -> vector<16x32xf32>
    %44 = arith.addf %35, %43 : vector<16x32xf32>
    %45 = vector.broadcast %2 : f32 to vector<16x32xf32>
    %46 = arith.addf %44, %45 : vector<16x32xf32>
    %cst_37 = arith.constant dense<0.000000e+00> : vector<16x32xf32>
    %47 = tpu.matmul %1, %46, %cst_37 {dimension_numbers = #tpu.dot_dimension_numbers<[1], [0], [0], [1], [0, 0, 1, 1], [], []>} : vector<16x16xf32>, vector<16x32xf32>, vector<16x32xf32> -> vector<16x32xf32>
    %c0_38 = arith.constant 0 : index
    %c0_39 = arith.constant 0 : index
    %c0_40 = arith.constant 0 : index
    %48 = vector.load %arg9[%c0_38, %c0_39, %c0_40] : memref<8x16x32xf32, #tpu.memory_space<vmem>>, vector<1x16x32xf32>
    %49 = vector.shape_cast %48 : vector<1x16x32xf32> to vector<16x32xf32>
    %50 = vector.shape_cast %47 : vector<16x32xf32> to vector<1x16x32xf32>
    tpu.vector_store %arg9[%c0_38, %c0_39, %c0_40], %50 {strides = array<i32>} : memref<8x16x32xf32, #tpu.memory_space<vmem>>, vector<1x16x32xf32>,
    %c1_41 = arith.constant 1 : index
    %c0_42 = arith.constant 0 : index
    %c0_43 = arith.constant 0 : index
    %51 = vector.load %arg1[%c1_41, %c0_42, %c0_43] : memref<8x16x32xf32, #tpu.memory_space<vmem>>, vector<1x16x32xf32>
    %52 = vector.shape_cast %51 : vector<1x16x32xf32> to vector<16x32xf32>
    %cst_44 = arith.constant dense<0.000000e+00> : vector<32x32xf32>
    %53 = tpu.matmul %0, %52, %cst_44 {dimension_numbers = #tpu.dot_dimension_numbers<[1], [0], [0], [1], [0, 0, 1, 1], [], []>} : vector<32x16xf32>, vector<16x32xf32>, vector<32x32xf32> -> vector<32x32xf32>
    %54 = vector.extract_strided_slice %53 {offsets = [0, 0], sizes = [16, 32], strides = [1, 1]} : vector<32x32xf32> to vector<16x32xf32>
    %c1_45 = arith.constant 1 : index
    %c0_46 = arith.constant 0 : index
    %c0_47 = arith.constant 0 : index
    %55 = vector.load %arg2[%c1_45, %c0_46, %c0_47] : memref<8x1x32xf32, #tpu.memory_space<vmem>>, vector<1x1x32xf32>
    %56 = vector.shape_cast %55 : vector<1x1x32xf32> to vector<1x32xf32>
    %57 = vector.broadcast %56 : vector<1x32xf32> to vector<16x32xf32>
    %58 = arith.mulf %54, %57 : vector<16x32xf32>
    %cst_48 = arith.constant 0.000000e+00 : f32
    %59 = vector.broadcast %cst_48 : f32 to vector<16x32xf32>
    %60 = arith.maximumf %58, %59 : vector<16x32xf32>
    %61 = vector.extract_strided_slice %53 {offsets = [16, 0], sizes = [16, 32], strides = [1, 1]} : vector<32x32xf32> to vector<16x32xf32>
    %c1_49 = arith.constant 1 : index
    %c0_50 = arith.constant 0 : index
    %c0_51 = arith.constant 0 : index
    %62 = vector.load %arg3[%c1_49, %c0_50, %c0_51] : memref<8x1x32xf32, #tpu.memory_space<vmem>>, vector<1x1x32xf32>
    %63 = vector.shape_cast %62 : vector<1x1x32xf32> to vector<1x32xf32>
    %64 = vector.broadcast %63 : vector<1x32xf32> to vector<16x32xf32>
    %65 = arith.mulf %61, %64 : vector<16x32xf32>
    %cst_52 = arith.constant 0.000000e+00 : f32
    %66 = vector.broadcast %cst_52 : f32 to vector<16x32xf32>
    %67 = arith.maximumf %65, %66 : vector<16x32xf32>
    %c0_53 = arith.constant 0 : index
    %c0_54 = arith.constant 0 : index
    %c0_55 = arith.constant 0 : index
    %68 = vector.load %arg6[%c0_53, %c0_54, %c0_55] : memref<3x32x32xf32, #tpu.memory_space<vmem>>, vector<1x32x32xf32>
    %69 = vector.shape_cast %68 : vector<1x32x32xf32> to vector<32x32xf32>
    %cst_56 = arith.constant dense<0.000000e+00> : vector<16x32xf32>
    %70 = tpu.matmul %60, %69, %cst_56 {dimension_numbers = #tpu.dot_dimension_numbers<[1], [0], [0], [1], [0, 0, 1, 1], [], []>} : vector<16x32xf32>, vector<32x32xf32>, vector<16x32xf32> -> vector<16x32xf32>
    %c0_57 = arith.constant 0 : index
    %c0_58 = arith.constant 0 : index
    %c0_59 = arith.constant 0 : index
    %71 = vector.load %arg7[%c0_57, %c0_58, %c0_59] : memref<3x32x32xf32, #tpu.memory_space<vmem>>, vector<1x32x32xf32>
    %72 = vector.shape_cast %71 : vector<1x32x32xf32> to vector<32x32xf32>
    %cst_60 = arith.constant dense<0.000000e+00> : vector<16x32xf32>
    %73 = tpu.matmul %67, %72, %cst_60 {dimension_numbers = #tpu.dot_dimension_numbers<[1], [0], [0], [1], [0, 0, 1, 1], [], []>} : vector<16x32xf32>, vector<32x32xf32>, vector<16x32xf32> -> vector<16x32xf32>
    %74 = arith.addf %70, %73 : vector<16x32xf32>
    %c1_i32_61 = arith.constant 1 : i32
    %75 = tpu.dynamic_rotate %74 by %c1_i32_61 dim 0 : vector<16x32xf32>, i32 -> vector<16x32xf32>
    %c1_62 = arith.constant 1 : index
    %c0_63 = arith.constant 0 : index
    %c0_64 = arith.constant 0 : index
    %76 = vector.load %arg6[%c1_62, %c0_63, %c0_64] : memref<3x32x32xf32, #tpu.memory_space<vmem>>, vector<1x32x32xf32>
    %77 = vector.shape_cast %76 : vector<1x32x32xf32> to vector<32x32xf32>
    %cst_65 = arith.constant dense<0.000000e+00> : vector<16x32xf32>
    %78 = tpu.matmul %60, %77, %cst_65 {dimension_numbers = #tpu.dot_dimension_numbers<[1], [0], [0], [1], [0, 0, 1, 1], [], []>} : vector<16x32xf32>, vector<32x32xf32>, vector<16x32xf32> -> vector<16x32xf32>
    %c1_66 = arith.constant 1 : index
    %c0_67 = arith.constant 0 : index
    %c0_68 = arith.constant 0 : index
    %79 = vector.load %arg7[%c1_66, %c0_67, %c0_68] : memref<3x32x32xf32, #tpu.memory_space<vmem>>, vector<1x32x32xf32>
    %80 = vector.shape_cast %79 : vector<1x32x32xf32> to vector<32x32xf32>
    %cst_69 = arith.constant dense<0.000000e+00> : vector<16x32xf32>
    %81 = tpu.matmul %67, %80, %cst_69 {dimension_numbers = #tpu.dot_dimension_numbers<[1], [0], [0], [1], [0, 0, 1, 1], [], []>} : vector<16x32xf32>, vector<32x32xf32>, vector<16x32xf32> -> vector<16x32xf32>
    %82 = arith.addf %78, %81 : vector<16x32xf32>
    %83 = arith.addf %75, %82 : vector<16x32xf32>
    %c2_70 = arith.constant 2 : index
    %c0_71 = arith.constant 0 : index
    %c0_72 = arith.constant 0 : index
    %84 = vector.load %arg6[%c2_70, %c0_71, %c0_72] : memref<3x32x32xf32, #tpu.memory_space<vmem>>, vector<1x32x32xf32>
    %85 = vector.shape_cast %84 : vector<1x32x32xf32> to vector<32x32xf32>
    %cst_73 = arith.constant dense<0.000000e+00> : vector<16x32xf32>
    %86 = tpu.matmul %60, %85, %cst_73 {dimension_numbers = #tpu.dot_dimension_numbers<[1], [0], [0], [1], [0, 0, 1, 1], [], []>} : vector<16x32xf32>, vector<32x32xf32>, vector<16x32xf32> -> vector<16x32xf32>
    %c2_74 = arith.constant 2 : index
    %c0_75 = arith.constant 0 : index
    %c0_76 = arith.constant 0 : index
    %87 = vector.load %arg7[%c2_74, %c0_75, %c0_76] : memref<3x32x32xf32, #tpu.memory_space<vmem>>, vector<1x32x32xf32>
    %88 = vector.shape_cast %87 : vector<1x32x32xf32> to vector<32x32xf32>
    %cst_77 = arith.constant dense<0.000000e+00> : vector<16x32xf32>
    %89 = tpu.matmul %67, %88, %cst_77 {dimension_numbers = #tpu.dot_dimension_numbers<[1], [0], [0], [1], [0, 0, 1, 1], [], []>} : vector<16x32xf32>, vector<32x32xf32>, vector<16x32xf32> -> vector<16x32xf32>
    %90 = arith.addf %86, %89 : vector<16x32xf32>
    %c15_i32_78 = arith.constant 15 : i32
    %91 = tpu.dynamic_rotate %90 by %c15_i32_78 dim 0 : vector<16x32xf32>, i32 -> vector<16x32xf32>
    %92 = arith.addf %83, %91 : vector<16x32xf32>
    %93 = vector.broadcast %2 : f32 to vector<16x32xf32>
    %94 = arith.addf %92, %93 : vector<16x32xf32>
    %cst_79 = arith.constant dense<0.000000e+00> : vector<16x32xf32>
    %95 = tpu.matmul %1, %94, %cst_79 {dimension_numbers = #tpu.dot_dimension_numbers<[1], [0], [0], [1], [0, 0, 1, 1], [], []>} : vector<16x16xf32>, vector<16x32xf32>, vector<16x32xf32> -> vector<16x32xf32>
    %c1_80 = arith.constant 1 : index
    %c0_81 = arith.constant 0 : index
    %c0_82 = arith.constant 0 : index
    %96 = vector.load %arg9[%c1_80, %c0_81, %c0_82] : memref<8x16x32xf32, #tpu.memory_space<vmem>>, vector<1x16x32xf32>
    %97 = vector.shape_cast %96 : vector<1x16x32xf32> to vector<16x32xf32>
    %98 = vector.shape_cast %95 : vector<16x32xf32> to vector<1x16x32xf32>
    tpu.vector_store %arg9[%c1_80, %c0_81, %c0_82], %98 {strides = array<i32>} : memref<8x16x32xf32, #tpu.memory_space<vmem>>, vector<1x16x32xf32>,
    %c2_83 = arith.constant 2 : index
    %c0_84 = arith.constant 0 : index
    %c0_85 = arith.constant 0 : index
    %99 = vector.load %arg1[%c2_83, %c0_84, %c0_85] : memref<8x16x32xf32, #tpu.memory_space<vmem>>, vector<1x16x32xf32>
    %100 = vector.shape_cast %99 : vector<1x16x32xf32> to vector<16x32xf32>
    %cst_86 = arith.constant dense<0.000000e+00> : vector<32x32xf32>
    %101 = tpu.matmul %0, %100, %cst_86 {dimension_numbers = #tpu.dot_dimension_numbers<[1], [0], [0], [1], [0, 0, 1, 1], [], []>} : vector<32x16xf32>, vector<16x32xf32>, vector<32x32xf32> -> vector<32x32xf32>
    %102 = vector.extract_strided_slice %101 {offsets = [0, 0], sizes = [16, 32], strides = [1, 1]} : vector<32x32xf32> to vector<16x32xf32>
    %c2_87 = arith.constant 2 : index
    %c0_88 = arith.constant 0 : index
    %c0_89 = arith.constant 0 : index
    %103 = vector.load %arg2[%c2_87, %c0_88, %c0_89] : memref<8x1x32xf32, #tpu.memory_space<vmem>>, vector<1x1x32xf32>
    %104 = vector.shape_cast %103 : vector<1x1x32xf32> to vector<1x32xf32>
    %105 = vector.broadcast %104 : vector<1x32xf32> to vector<16x32xf32>
    %106 = arith.mulf %102, %105 : vector<16x32xf32>
    %cst_90 = arith.constant 0.000000e+00 : f32
    %107 = vector.broadcast %cst_90 : f32 to vector<16x32xf32>
    %108 = arith.maximumf %106, %107 : vector<16x32xf32>
    %109 = vector.extract_strided_slice %101 {offsets = [16, 0], sizes = [16, 32], strides = [1, 1]} : vector<32x32xf32> to vector<16x32xf32>
    %c2_91 = arith.constant 2 : index
    %c0_92 = arith.constant 0 : index
    %c0_93 = arith.constant 0 : index
    %110 = vector.load %arg3[%c2_91, %c0_92, %c0_93] : memref<8x1x32xf32, #tpu.memory_space<vmem>>, vector<1x1x32xf32>
    %111 = vector.shape_cast %110 : vector<1x1x32xf32> to vector<1x32xf32>
    %112 = vector.broadcast %111 : vector<1x32xf32> to vector<16x32xf32>
    %113 = arith.mulf %109, %112 : vector<16x32xf32>
    %cst_94 = arith.constant 0.000000e+00 : f32
    %114 = vector.broadcast %cst_94 : f32 to vector<16x32xf32>
    %115 = arith.maximumf %113, %114 : vector<16x32xf32>
    %c0_95 = arith.constant 0 : index
    %c0_96 = arith.constant 0 : index
    %c0_97 = arith.constant 0 : index
    %116 = vector.load %arg6[%c0_95, %c0_96, %c0_97] : memref<3x32x32xf32, #tpu.memory_space<vmem>>, vector<1x32x32xf32>
    %117 = vector.shape_cast %116 : vector<1x32x32xf32> to vector<32x32xf32>
    %cst_98 = arith.constant dense<0.000000e+00> : vector<16x32xf32>
    %118 = tpu.matmul %108, %117, %cst_98 {dimension_numbers = #tpu.dot_dimension_numbers<[1], [0], [0], [1], [0, 0, 1, 1], [], []>} : vector<16x32xf32>, vector<32x32xf32>, vector<16x32xf32> -> vector<16x32xf32>
    %c0_99 = arith.constant 0 : index
    %c0_100 = arith.constant 0 : index
    %c0_101 = arith.constant 0 : index
    %119 = vector.load %arg7[%c0_99, %c0_100, %c0_101] : memref<3x32x32xf32, #tpu.memory_space<vmem>>, vector<1x32x32xf32>
    %120 = vector.shape_cast %119 : vector<1x32x32xf32> to vector<32x32xf32>
    %cst_102 = arith.constant dense<0.000000e+00> : vector<16x32xf32>
    %121 = tpu.matmul %115, %120, %cst_102 {dimension_numbers = #tpu.dot_dimension_numbers<[1], [0], [0], [1], [0, 0, 1, 1], [], []>} : vector<16x32xf32>, vector<32x32xf32>, vector<16x32xf32> -> vector<16x32xf32>
    %122 = arith.addf %118, %121 : vector<16x32xf32>
    %c1_i32_103 = arith.constant 1 : i32
    %123 = tpu.dynamic_rotate %122 by %c1_i32_103 dim 0 : vector<16x32xf32>, i32 -> vector<16x32xf32>
    %c1_104 = arith.constant 1 : index
    %c0_105 = arith.constant 0 : index
    %c0_106 = arith.constant 0 : index
    %124 = vector.load %arg6[%c1_104, %c0_105, %c0_106] : memref<3x32x32xf32, #tpu.memory_space<vmem>>, vector<1x32x32xf32>
    %125 = vector.shape_cast %124 : vector<1x32x32xf32> to vector<32x32xf32>
    %cst_107 = arith.constant dense<0.000000e+00> : vector<16x32xf32>
    %126 = tpu.matmul %108, %125, %cst_107 {dimension_numbers = #tpu.dot_dimension_numbers<[1], [0], [0], [1], [0, 0, 1, 1], [], []>} : vector<16x32xf32>, vector<32x32xf32>, vector<16x32xf32> -> vector<16x32xf32>
    %c1_108 = arith.constant 1 : index
    %c0_109 = arith.constant 0 : index
    %c0_110 = arith.constant 0 : index
    %127 = vector.load %arg7[%c1_108, %c0_109, %c0_110] : memref<3x32x32xf32, #tpu.memory_space<vmem>>, vector<1x32x32xf32>
    %128 = vector.shape_cast %127 : vector<1x32x32xf32> to vector<32x32xf32>
    %cst_111 = arith.constant dense<0.000000e+00> : vector<16x32xf32>
    %129 = tpu.matmul %115, %128, %cst_111 {dimension_numbers = #tpu.dot_dimension_numbers<[1], [0], [0], [1], [0, 0, 1, 1], [], []>} : vector<16x32xf32>, vector<32x32xf32>, vector<16x32xf32> -> vector<16x32xf32>
    %130 = arith.addf %126, %129 : vector<16x32xf32>
    %131 = arith.addf %123, %130 : vector<16x32xf32>
    %c2_112 = arith.constant 2 : index
    %c0_113 = arith.constant 0 : index
    %c0_114 = arith.constant 0 : index
    %132 = vector.load %arg6[%c2_112, %c0_113, %c0_114] : memref<3x32x32xf32, #tpu.memory_space<vmem>>, vector<1x32x32xf32>
    %133 = vector.shape_cast %132 : vector<1x32x32xf32> to vector<32x32xf32>
    %cst_115 = arith.constant dense<0.000000e+00> : vector<16x32xf32>
    %134 = tpu.matmul %108, %133, %cst_115 {dimension_numbers = #tpu.dot_dimension_numbers<[1], [0], [0], [1], [0, 0, 1, 1], [], []>} : vector<16x32xf32>, vector<32x32xf32>, vector<16x32xf32> -> vector<16x32xf32>
    %c2_116 = arith.constant 2 : index
    %c0_117 = arith.constant 0 : index
    %c0_118 = arith.constant 0 : index
    %135 = vector.load %arg7[%c2_116, %c0_117, %c0_118] : memref<3x32x32xf32, #tpu.memory_space<vmem>>, vector<1x32x32xf32>
    %136 = vector.shape_cast %135 : vector<1x32x32xf32> to vector<32x32xf32>
    %cst_119 = arith.constant dense<0.000000e+00> : vector<16x32xf32>
    %137 = tpu.matmul %115, %136, %cst_119 {dimension_numbers = #tpu.dot_dimension_numbers<[1], [0], [0], [1], [0, 0, 1, 1], [], []>} : vector<16x32xf32>, vector<32x32xf32>, vector<16x32xf32> -> vector<16x32xf32>
    %138 = arith.addf %134, %137 : vector<16x32xf32>
    %c15_i32_120 = arith.constant 15 : i32
    %139 = tpu.dynamic_rotate %138 by %c15_i32_120 dim 0 : vector<16x32xf32>, i32 -> vector<16x32xf32>
    %140 = arith.addf %131, %139 : vector<16x32xf32>
    %141 = vector.broadcast %2 : f32 to vector<16x32xf32>
    %142 = arith.addf %140, %141 : vector<16x32xf32>
    %cst_121 = arith.constant dense<0.000000e+00> : vector<16x32xf32>
    %143 = tpu.matmul %1, %142, %cst_121 {dimension_numbers = #tpu.dot_dimension_numbers<[1], [0], [0], [1], [0, 0, 1, 1], [], []>} : vector<16x16xf32>, vector<16x32xf32>, vector<16x32xf32> -> vector<16x32xf32>
    %c2_122 = arith.constant 2 : index
    %c0_123 = arith.constant 0 : index
    %c0_124 = arith.constant 0 : index
    %144 = vector.load %arg9[%c2_122, %c0_123, %c0_124] : memref<8x16x32xf32, #tpu.memory_space<vmem>>, vector<1x16x32xf32>
    %145 = vector.shape_cast %144 : vector<1x16x32xf32> to vector<16x32xf32>
    %146 = vector.shape_cast %143 : vector<16x32xf32> to vector<1x16x32xf32>
    tpu.vector_store %arg9[%c2_122, %c0_123, %c0_124], %146 {strides = array<i32>} : memref<8x16x32xf32, #tpu.memory_space<vmem>>, vector<1x16x32xf32>,
    %c3 = arith.constant 3 : index
    %c0_125 = arith.constant 0 : index
    %c0_126 = arith.constant 0 : index
    %147 = vector.load %arg1[%c3, %c0_125, %c0_126] : memref<8x16x32xf32, #tpu.memory_space<vmem>>, vector<1x16x32xf32>
    %148 = vector.shape_cast %147 : vector<1x16x32xf32> to vector<16x32xf32>
    %cst_127 = arith.constant dense<0.000000e+00> : vector<32x32xf32>
    %149 = tpu.matmul %0, %148, %cst_127 {dimension_numbers = #tpu.dot_dimension_numbers<[1], [0], [0], [1], [0, 0, 1, 1], [], []>} : vector<32x16xf32>, vector<16x32xf32>, vector<32x32xf32> -> vector<32x32xf32>
    %150 = vector.extract_strided_slice %149 {offsets = [0, 0], sizes = [16, 32], strides = [1, 1]} : vector<32x32xf32> to vector<16x32xf32>
    %c3_128 = arith.constant 3 : index
    %c0_129 = arith.constant 0 : index
    %c0_130 = arith.constant 0 : index
    %151 = vector.load %arg2[%c3_128, %c0_129, %c0_130] : memref<8x1x32xf32, #tpu.memory_space<vmem>>, vector<1x1x32xf32>
    %152 = vector.shape_cast %151 : vector<1x1x32xf32> to vector<1x32xf32>
    %153 = vector.broadcast %152 : vector<1x32xf32> to vector<16x32xf32>
    %154 = arith.mulf %150, %153 : vector<16x32xf32>
    %cst_131 = arith.constant 0.000000e+00 : f32
    %155 = vector.broadcast %cst_131 : f32 to vector<16x32xf32>
    %156 = arith.maximumf %154, %155 : vector<16x32xf32>
    %157 = vector.extract_strided_slice %149 {offsets = [16, 0], sizes = [16, 32], strides = [1, 1]} : vector<32x32xf32> to vector<16x32xf32>
    %c3_132 = arith.constant 3 : index
    %c0_133 = arith.constant 0 : index
    %c0_134 = arith.constant 0 : index
    %158 = vector.load %arg3[%c3_132, %c0_133, %c0_134] : memref<8x1x32xf32, #tpu.memory_space<vmem>>, vector<1x1x32xf32>
    %159 = vector.shape_cast %158 : vector<1x1x32xf32> to vector<1x32xf32>
    %160 = vector.broadcast %159 : vector<1x32xf32> to vector<16x32xf32>
    %161 = arith.mulf %157, %160 : vector<16x32xf32>
    %cst_135 = arith.constant 0.000000e+00 : f32
    %162 = vector.broadcast %cst_135 : f32 to vector<16x32xf32>
    %163 = arith.maximumf %161, %162 : vector<16x32xf32>
    %c0_136 = arith.constant 0 : index
    %c0_137 = arith.constant 0 : index
    %c0_138 = arith.constant 0 : index
    %164 = vector.load %arg6[%c0_136, %c0_137, %c0_138] : memref<3x32x32xf32, #tpu.memory_space<vmem>>, vector<1x32x32xf32>
    %165 = vector.shape_cast %164 : vector<1x32x32xf32> to vector<32x32xf32>
    %cst_139 = arith.constant dense<0.000000e+00> : vector<16x32xf32>
    %166 = tpu.matmul %156, %165, %cst_139 {dimension_numbers = #tpu.dot_dimension_numbers<[1], [0], [0], [1], [0, 0, 1, 1], [], []>} : vector<16x32xf32>, vector<32x32xf32>, vector<16x32xf32> -> vector<16x32xf32>
    %c0_140 = arith.constant 0 : index
    %c0_141 = arith.constant 0 : index
    %c0_142 = arith.constant 0 : index
    %167 = vector.load %arg7[%c0_140, %c0_141, %c0_142] : memref<3x32x32xf32, #tpu.memory_space<vmem>>, vector<1x32x32xf32>
    %168 = vector.shape_cast %167 : vector<1x32x32xf32> to vector<32x32xf32>
    %cst_143 = arith.constant dense<0.000000e+00> : vector<16x32xf32>
    %169 = tpu.matmul %163, %168, %cst_143 {dimension_numbers = #tpu.dot_dimension_numbers<[1], [0], [0], [1], [0, 0, 1, 1], [], []>} : vector<16x32xf32>, vector<32x32xf32>, vector<16x32xf32> -> vector<16x32xf32>
    %170 = arith.addf %166, %169 : vector<16x32xf32>
    %c1_i32_144 = arith.constant 1 : i32
    %171 = tpu.dynamic_rotate %170 by %c1_i32_144 dim 0 : vector<16x32xf32>, i32 -> vector<16x32xf32>
    %c1_145 = arith.constant 1 : index
    %c0_146 = arith.constant 0 : index
    %c0_147 = arith.constant 0 : index
    %172 = vector.load %arg6[%c1_145, %c0_146, %c0_147] : memref<3x32x32xf32, #tpu.memory_space<vmem>>, vector<1x32x32xf32>
    %173 = vector.shape_cast %172 : vector<1x32x32xf32> to vector<32x32xf32>
    %cst_148 = arith.constant dense<0.000000e+00> : vector<16x32xf32>
    %174 = tpu.matmul %156, %173, %cst_148 {dimension_numbers = #tpu.dot_dimension_numbers<[1], [0], [0], [1], [0, 0, 1, 1], [], []>} : vector<16x32xf32>, vector<32x32xf32>, vector<16x32xf32> -> vector<16x32xf32>
    %c1_149 = arith.constant 1 : index
    %c0_150 = arith.constant 0 : index
    %c0_151 = arith.constant 0 : index
    %175 = vector.load %arg7[%c1_149, %c0_150, %c0_151] : memref<3x32x32xf32, #tpu.memory_space<vmem>>, vector<1x32x32xf32>
    %176 = vector.shape_cast %175 : vector<1x32x32xf32> to vector<32x32xf32>
    %cst_152 = arith.constant dense<0.000000e+00> : vector<16x32xf32>
    %177 = tpu.matmul %163, %176, %cst_152 {dimension_numbers = #tpu.dot_dimension_numbers<[1], [0], [0], [1], [0, 0, 1, 1], [], []>} : vector<16x32xf32>, vector<32x32xf32>, vector<16x32xf32> -> vector<16x32xf32>
    %178 = arith.addf %174, %177 : vector<16x32xf32>
    %179 = arith.addf %171, %178 : vector<16x32xf32>
    %c2_153 = arith.constant 2 : index
    %c0_154 = arith.constant 0 : index
    %c0_155 = arith.constant 0 : index
    %180 = vector.load %arg6[%c2_153, %c0_154, %c0_155] : memref<3x32x32xf32, #tpu.memory_space<vmem>>, vector<1x32x32xf32>
    %181 = vector.shape_cast %180 : vector<1x32x32xf32> to vector<32x32xf32>
    %cst_156 = arith.constant dense<0.000000e+00> : vector<16x32xf32>
    %182 = tpu.matmul %156, %181, %cst_156 {dimension_numbers = #tpu.dot_dimension_numbers<[1], [0], [0], [1], [0, 0, 1, 1], [], []>} : vector<16x32xf32>, vector<32x32xf32>, vector<16x32xf32> -> vector<16x32xf32>
    %c2_157 = arith.constant 2 : index
    %c0_158 = arith.constant 0 : index
    %c0_159 = arith.constant 0 : index
    %183 = vector.load %arg7[%c2_157, %c0_158, %c0_159] : memref<3x32x32xf32, #tpu.memory_space<vmem>>, vector<1x32x32xf32>
    %184 = vector.shape_cast %183 : vector<1x32x32xf32> to vector<32x32xf32>
    %cst_160 = arith.constant dense<0.000000e+00> : vector<16x32xf32>
    %185 = tpu.matmul %163, %184, %cst_160 {dimension_numbers = #tpu.dot_dimension_numbers<[1], [0], [0], [1], [0, 0, 1, 1], [], []>} : vector<16x32xf32>, vector<32x32xf32>, vector<16x32xf32> -> vector<16x32xf32>
    %186 = arith.addf %182, %185 : vector<16x32xf32>
    %c15_i32_161 = arith.constant 15 : i32
    %187 = tpu.dynamic_rotate %186 by %c15_i32_161 dim 0 : vector<16x32xf32>, i32 -> vector<16x32xf32>
    %188 = arith.addf %179, %187 : vector<16x32xf32>
    %189 = vector.broadcast %2 : f32 to vector<16x32xf32>
    %190 = arith.addf %188, %189 : vector<16x32xf32>
    %cst_162 = arith.constant dense<0.000000e+00> : vector<16x32xf32>
    %191 = tpu.matmul %1, %190, %cst_162 {dimension_numbers = #tpu.dot_dimension_numbers<[1], [0], [0], [1], [0, 0, 1, 1], [], []>} : vector<16x16xf32>, vector<16x32xf32>, vector<16x32xf32> -> vector<16x32xf32>
    %c3_163 = arith.constant 3 : index
    %c0_164 = arith.constant 0 : index
    %c0_165 = arith.constant 0 : index
    %192 = vector.load %arg9[%c3_163, %c0_164, %c0_165] : memref<8x16x32xf32, #tpu.memory_space<vmem>>, vector<1x16x32xf32>
    %193 = vector.shape_cast %192 : vector<1x16x32xf32> to vector<16x32xf32>
    %194 = vector.shape_cast %191 : vector<16x32xf32> to vector<1x16x32xf32>
    tpu.vector_store %arg9[%c3_163, %c0_164, %c0_165], %194 {strides = array<i32>} : memref<8x16x32xf32, #tpu.memory_space<vmem>>, vector<1x16x32xf32>,
    %c4 = arith.constant 4 : index
    %c0_166 = arith.constant 0 : index
    %c0_167 = arith.constant 0 : index
    %195 = vector.load %arg1[%c4, %c0_166, %c0_167] : memref<8x16x32xf32, #tpu.memory_space<vmem>>, vector<1x16x32xf32>
    %196 = vector.shape_cast %195 : vector<1x16x32xf32> to vector<16x32xf32>
    %cst_168 = arith.constant dense<0.000000e+00> : vector<32x32xf32>
    %197 = tpu.matmul %0, %196, %cst_168 {dimension_numbers = #tpu.dot_dimension_numbers<[1], [0], [0], [1], [0, 0, 1, 1], [], []>} : vector<32x16xf32>, vector<16x32xf32>, vector<32x32xf32> -> vector<32x32xf32>
    %198 = vector.extract_strided_slice %197 {offsets = [0, 0], sizes = [16, 32], strides = [1, 1]} : vector<32x32xf32> to vector<16x32xf32>
    %c4_169 = arith.constant 4 : index
    %c0_170 = arith.constant 0 : index
    %c0_171 = arith.constant 0 : index
    %199 = vector.load %arg2[%c4_169, %c0_170, %c0_171] : memref<8x1x32xf32, #tpu.memory_space<vmem>>, vector<1x1x32xf32>
    %200 = vector.shape_cast %199 : vector<1x1x32xf32> to vector<1x32xf32>
    %201 = vector.broadcast %200 : vector<1x32xf32> to vector<16x32xf32>
    %202 = arith.mulf %198, %201 : vector<16x32xf32>
    %cst_172 = arith.constant 0.000000e+00 : f32
    %203 = vector.broadcast %cst_172 : f32 to vector<16x32xf32>
    %204 = arith.maximumf %202, %203 : vector<16x32xf32>
    %205 = vector.extract_strided_slice %197 {offsets = [16, 0], sizes = [16, 32], strides = [1, 1]} : vector<32x32xf32> to vector<16x32xf32>
    %c4_173 = arith.constant 4 : index
    %c0_174 = arith.constant 0 : index
    %c0_175 = arith.constant 0 : index
    %206 = vector.load %arg3[%c4_173, %c0_174, %c0_175] : memref<8x1x32xf32, #tpu.memory_space<vmem>>, vector<1x1x32xf32>
    %207 = vector.shape_cast %206 : vector<1x1x32xf32> to vector<1x32xf32>
    %208 = vector.broadcast %207 : vector<1x32xf32> to vector<16x32xf32>
    %209 = arith.mulf %205, %208 : vector<16x32xf32>
    %cst_176 = arith.constant 0.000000e+00 : f32
    %210 = vector.broadcast %cst_176 : f32 to vector<16x32xf32>
    %211 = arith.maximumf %209, %210 : vector<16x32xf32>
    %c0_177 = arith.constant 0 : index
    %c0_178 = arith.constant 0 : index
    %c0_179 = arith.constant 0 : index
    %212 = vector.load %arg6[%c0_177, %c0_178, %c0_179] : memref<3x32x32xf32, #tpu.memory_space<vmem>>, vector<1x32x32xf32>
    %213 = vector.shape_cast %212 : vector<1x32x32xf32> to vector<32x32xf32>
    %cst_180 = arith.constant dense<0.000000e+00> : vector<16x32xf32>
    %214 = tpu.matmul %204, %213, %cst_180 {dimension_numbers = #tpu.dot_dimension_numbers<[1], [0], [0], [1], [0, 0, 1, 1], [], []>} : vector<16x32xf32>, vector<32x32xf32>, vector<16x32xf32> -> vector<16x32xf32>
    %c0_181 = arith.constant 0 : index
    %c0_182 = arith.constant 0 : index
    %c0_183 = arith.constant 0 : index
    %215 = vector.load %arg7[%c0_181, %c0_182, %c0_183] : memref<3x32x32xf32, #tpu.memory_space<vmem>>, vector<1x32x32xf32>
    %216 = vector.shape_cast %215 : vector<1x32x32xf32> to vector<32x32xf32>
    %cst_184 = arith.constant dense<0.000000e+00> : vector<16x32xf32>
    %217 = tpu.matmul %211, %216, %cst_184 {dimension_numbers = #tpu.dot_dimension_numbers<[1], [0], [0], [1], [0, 0, 1, 1], [], []>} : vector<16x32xf32>, vector<32x32xf32>, vector<16x32xf32> -> vector<16x32xf32>
    %218 = arith.addf %214, %217 : vector<16x32xf32>
    %c1_i32_185 = arith.constant 1 : i32
    %219 = tpu.dynamic_rotate %218 by %c1_i32_185 dim 0 : vector<16x32xf32>, i32 -> vector<16x32xf32>
    %c1_186 = arith.constant 1 : index
    %c0_187 = arith.constant 0 : index
    %c0_188 = arith.constant 0 : index
    %220 = vector.load %arg6[%c1_186, %c0_187, %c0_188] : memref<3x32x32xf32, #tpu.memory_space<vmem>>, vector<1x32x32xf32>
    %221 = vector.shape_cast %220 : vector<1x32x32xf32> to vector<32x32xf32>
    %cst_189 = arith.constant dense<0.000000e+00> : vector<16x32xf32>
    %222 = tpu.matmul %204, %221, %cst_189 {dimension_numbers = #tpu.dot_dimension_numbers<[1], [0], [0], [1], [0, 0, 1, 1], [], []>} : vector<16x32xf32>, vector<32x32xf32>, vector<16x32xf32> -> vector<16x32xf32>
    %c1_190 = arith.constant 1 : index
    %c0_191 = arith.constant 0 : index
    %c0_192 = arith.constant 0 : index
    %223 = vector.load %arg7[%c1_190, %c0_191, %c0_192] : memref<3x32x32xf32, #tpu.memory_space<vmem>>, vector<1x32x32xf32>
    %224 = vector.shape_cast %223 : vector<1x32x32xf32> to vector<32x32xf32>
    %cst_193 = arith.constant dense<0.000000e+00> : vector<16x32xf32>
    %225 = tpu.matmul %211, %224, %cst_193 {dimension_numbers = #tpu.dot_dimension_numbers<[1], [0], [0], [1], [0, 0, 1, 1], [], []>} : vector<16x32xf32>, vector<32x32xf32>, vector<16x32xf32> -> vector<16x32xf32>
    %226 = arith.addf %222, %225 : vector<16x32xf32>
    %227 = arith.addf %219, %226 : vector<16x32xf32>
    %c2_194 = arith.constant 2 : index
    %c0_195 = arith.constant 0 : index
    %c0_196 = arith.constant 0 : index
    %228 = vector.load %arg6[%c2_194, %c0_195, %c0_196] : memref<3x32x32xf32, #tpu.memory_space<vmem>>, vector<1x32x32xf32>
    %229 = vector.shape_cast %228 : vector<1x32x32xf32> to vector<32x32xf32>
    %cst_197 = arith.constant dense<0.000000e+00> : vector<16x32xf32>
    %230 = tpu.matmul %204, %229, %cst_197 {dimension_numbers = #tpu.dot_dimension_numbers<[1], [0], [0], [1], [0, 0, 1, 1], [], []>} : vector<16x32xf32>, vector<32x32xf32>, vector<16x32xf32> -> vector<16x32xf32>
    %c2_198 = arith.constant 2 : index
    %c0_199 = arith.constant 0 : index
    %c0_200 = arith.constant 0 : index
    %231 = vector.load %arg7[%c2_198, %c0_199, %c0_200] : memref<3x32x32xf32, #tpu.memory_space<vmem>>, vector<1x32x32xf32>
    %232 = vector.shape_cast %231 : vector<1x32x32xf32> to vector<32x32xf32>
    %cst_201 = arith.constant dense<0.000000e+00> : vector<16x32xf32>
    %233 = tpu.matmul %211, %232, %cst_201 {dimension_numbers = #tpu.dot_dimension_numbers<[1], [0], [0], [1], [0, 0, 1, 1], [], []>} : vector<16x32xf32>, vector<32x32xf32>, vector<16x32xf32> -> vector<16x32xf32>
    %234 = arith.addf %230, %233 : vector<16x32xf32>
    %c15_i32_202 = arith.constant 15 : i32
    %235 = tpu.dynamic_rotate %234 by %c15_i32_202 dim 0 : vector<16x32xf32>, i32 -> vector<16x32xf32>
    %236 = arith.addf %227, %235 : vector<16x32xf32>
    %237 = vector.broadcast %2 : f32 to vector<16x32xf32>
    %238 = arith.addf %236, %237 : vector<16x32xf32>
    %cst_203 = arith.constant dense<0.000000e+00> : vector<16x32xf32>
    %239 = tpu.matmul %1, %238, %cst_203 {dimension_numbers = #tpu.dot_dimension_numbers<[1], [0], [0], [1], [0, 0, 1, 1], [], []>} : vector<16x16xf32>, vector<16x32xf32>, vector<16x32xf32> -> vector<16x32xf32>
    %c4_204 = arith.constant 4 : index
    %c0_205 = arith.constant 0 : index
    %c0_206 = arith.constant 0 : index
    %240 = vector.load %arg9[%c4_204, %c0_205, %c0_206] : memref<8x16x32xf32, #tpu.memory_space<vmem>>, vector<1x16x32xf32>
    %241 = vector.shape_cast %240 : vector<1x16x32xf32> to vector<16x32xf32>
    %242 = vector.shape_cast %239 : vector<16x32xf32> to vector<1x16x32xf32>
    tpu.vector_store %arg9[%c4_204, %c0_205, %c0_206], %242 {strides = array<i32>} : memref<8x16x32xf32, #tpu.memory_space<vmem>>, vector<1x16x32xf32>,
    %c5 = arith.constant 5 : index
    %c0_207 = arith.constant 0 : index
    %c0_208 = arith.constant 0 : index
    %243 = vector.load %arg1[%c5, %c0_207, %c0_208] : memref<8x16x32xf32, #tpu.memory_space<vmem>>, vector<1x16x32xf32>
    %244 = vector.shape_cast %243 : vector<1x16x32xf32> to vector<16x32xf32>
    %cst_209 = arith.constant dense<0.000000e+00> : vector<32x32xf32>
    %245 = tpu.matmul %0, %244, %cst_209 {dimension_numbers = #tpu.dot_dimension_numbers<[1], [0], [0], [1], [0, 0, 1, 1], [], []>} : vector<32x16xf32>, vector<16x32xf32>, vector<32x32xf32> -> vector<32x32xf32>
    %246 = vector.extract_strided_slice %245 {offsets = [0, 0], sizes = [16, 32], strides = [1, 1]} : vector<32x32xf32> to vector<16x32xf32>
    %c5_210 = arith.constant 5 : index
    %c0_211 = arith.constant 0 : index
    %c0_212 = arith.constant 0 : index
    %247 = vector.load %arg2[%c5_210, %c0_211, %c0_212] : memref<8x1x32xf32, #tpu.memory_space<vmem>>, vector<1x1x32xf32>
    %248 = vector.shape_cast %247 : vector<1x1x32xf32> to vector<1x32xf32>
    %249 = vector.broadcast %248 : vector<1x32xf32> to vector<16x32xf32>
    %250 = arith.mulf %246, %249 : vector<16x32xf32>
    %cst_213 = arith.constant 0.000000e+00 : f32
    %251 = vector.broadcast %cst_213 : f32 to vector<16x32xf32>
    %252 = arith.maximumf %250, %251 : vector<16x32xf32>
    %253 = vector.extract_strided_slice %245 {offsets = [16, 0], sizes = [16, 32], strides = [1, 1]} : vector<32x32xf32> to vector<16x32xf32>
    %c5_214 = arith.constant 5 : index
    %c0_215 = arith.constant 0 : index
    %c0_216 = arith.constant 0 : index
    %254 = vector.load %arg3[%c5_214, %c0_215, %c0_216] : memref<8x1x32xf32, #tpu.memory_space<vmem>>, vector<1x1x32xf32>
    %255 = vector.shape_cast %254 : vector<1x1x32xf32> to vector<1x32xf32>
    %256 = vector.broadcast %255 : vector<1x32xf32> to vector<16x32xf32>
    %257 = arith.mulf %253, %256 : vector<16x32xf32>
    %cst_217 = arith.constant 0.000000e+00 : f32
    %258 = vector.broadcast %cst_217 : f32 to vector<16x32xf32>
    %259 = arith.maximumf %257, %258 : vector<16x32xf32>
    %c0_218 = arith.constant 0 : index
    %c0_219 = arith.constant 0 : index
    %c0_220 = arith.constant 0 : index
    %260 = vector.load %arg6[%c0_218, %c0_219, %c0_220] : memref<3x32x32xf32, #tpu.memory_space<vmem>>, vector<1x32x32xf32>
    %261 = vector.shape_cast %260 : vector<1x32x32xf32> to vector<32x32xf32>
    %cst_221 = arith.constant dense<0.000000e+00> : vector<16x32xf32>
    %262 = tpu.matmul %252, %261, %cst_221 {dimension_numbers = #tpu.dot_dimension_numbers<[1], [0], [0], [1], [0, 0, 1, 1], [], []>} : vector<16x32xf32>, vector<32x32xf32>, vector<16x32xf32> -> vector<16x32xf32>
    %c0_222 = arith.constant 0 : index
    %c0_223 = arith.constant 0 : index
    %c0_224 = arith.constant 0 : index
    %263 = vector.load %arg7[%c0_222, %c0_223, %c0_224] : memref<3x32x32xf32, #tpu.memory_space<vmem>>, vector<1x32x32xf32>
    %264 = vector.shape_cast %263 : vector<1x32x32xf32> to vector<32x32xf32>
    %cst_225 = arith.constant dense<0.000000e+00> : vector<16x32xf32>
    %265 = tpu.matmul %259, %264, %cst_225 {dimension_numbers = #tpu.dot_dimension_numbers<[1], [0], [0], [1], [0, 0, 1, 1], [], []>} : vector<16x32xf32>, vector<32x32xf32>, vector<16x32xf32> -> vector<16x32xf32>
    %266 = arith.addf %262, %265 : vector<16x32xf32>
    %c1_i32_226 = arith.constant 1 : i32
    %267 = tpu.dynamic_rotate %266 by %c1_i32_226 dim 0 : vector<16x32xf32>, i32 -> vector<16x32xf32>
    %c1_227 = arith.constant 1 : index
    %c0_228 = arith.constant 0 : index
    %c0_229 = arith.constant 0 : index
    %268 = vector.load %arg6[%c1_227, %c0_228, %c0_229] : memref<3x32x32xf32, #tpu.memory_space<vmem>>, vector<1x32x32xf32>
    %269 = vector.shape_cast %268 : vector<1x32x32xf32> to vector<32x32xf32>
    %cst_230 = arith.constant dense<0.000000e+00> : vector<16x32xf32>
    %270 = tpu.matmul %252, %269, %cst_230 {dimension_numbers = #tpu.dot_dimension_numbers<[1], [0], [0], [1], [0, 0, 1, 1], [], []>} : vector<16x32xf32>, vector<32x32xf32>, vector<16x32xf32> -> vector<16x32xf32>
    %c1_231 = arith.constant 1 : index
    %c0_232 = arith.constant 0 : index
    %c0_233 = arith.constant 0 : index
    %271 = vector.load %arg7[%c1_231, %c0_232, %c0_233] : memref<3x32x32xf32, #tpu.memory_space<vmem>>, vector<1x32x32xf32>
    %272 = vector.shape_cast %271 : vector<1x32x32xf32> to vector<32x32xf32>
    %cst_234 = arith.constant dense<0.000000e+00> : vector<16x32xf32>
    %273 = tpu.matmul %259, %272, %cst_234 {dimension_numbers = #tpu.dot_dimension_numbers<[1], [0], [0], [1], [0, 0, 1, 1], [], []>} : vector<16x32xf32>, vector<32x32xf32>, vector<16x32xf32> -> vector<16x32xf32>
    %274 = arith.addf %270, %273 : vector<16x32xf32>
    %275 = arith.addf %267, %274 : vector<16x32xf32>
    %c2_235 = arith.constant 2 : index
    %c0_236 = arith.constant 0 : index
    %c0_237 = arith.constant 0 : index
    %276 = vector.load %arg6[%c2_235, %c0_236, %c0_237] : memref<3x32x32xf32, #tpu.memory_space<vmem>>, vector<1x32x32xf32>
    %277 = vector.shape_cast %276 : vector<1x32x32xf32> to vector<32x32xf32>
    %cst_238 = arith.constant dense<0.000000e+00> : vector<16x32xf32>
    %278 = tpu.matmul %252, %277, %cst_238 {dimension_numbers = #tpu.dot_dimension_numbers<[1], [0], [0], [1], [0, 0, 1, 1], [], []>} : vector<16x32xf32>, vector<32x32xf32>, vector<16x32xf32> -> vector<16x32xf32>
    %c2_239 = arith.constant 2 : index
    %c0_240 = arith.constant 0 : index
    %c0_241 = arith.constant 0 : index
    %279 = vector.load %arg7[%c2_239, %c0_240, %c0_241] : memref<3x32x32xf32, #tpu.memory_space<vmem>>, vector<1x32x32xf32>
    %280 = vector.shape_cast %279 : vector<1x32x32xf32> to vector<32x32xf32>
    %cst_242 = arith.constant dense<0.000000e+00> : vector<16x32xf32>
    %281 = tpu.matmul %259, %280, %cst_242 {dimension_numbers = #tpu.dot_dimension_numbers<[1], [0], [0], [1], [0, 0, 1, 1], [], []>} : vector<16x32xf32>, vector<32x32xf32>, vector<16x32xf32> -> vector<16x32xf32>
    %282 = arith.addf %278, %281 : vector<16x32xf32>
    %c15_i32_243 = arith.constant 15 : i32
    %283 = tpu.dynamic_rotate %282 by %c15_i32_243 dim 0 : vector<16x32xf32>, i32 -> vector<16x32xf32>
    %284 = arith.addf %275, %283 : vector<16x32xf32>
    %285 = vector.broadcast %2 : f32 to vector<16x32xf32>
    %286 = arith.addf %284, %285 : vector<16x32xf32>
    %cst_244 = arith.constant dense<0.000000e+00> : vector<16x32xf32>
    %287 = tpu.matmul %1, %286, %cst_244 {dimension_numbers = #tpu.dot_dimension_numbers<[1], [0], [0], [1], [0, 0, 1, 1], [], []>} : vector<16x16xf32>, vector<16x32xf32>, vector<16x32xf32> -> vector<16x32xf32>
    %c5_245 = arith.constant 5 : index
    %c0_246 = arith.constant 0 : index
    %c0_247 = arith.constant 0 : index
    %288 = vector.load %arg9[%c5_245, %c0_246, %c0_247] : memref<8x16x32xf32, #tpu.memory_space<vmem>>, vector<1x16x32xf32>
    %289 = vector.shape_cast %288 : vector<1x16x32xf32> to vector<16x32xf32>
    %290 = vector.shape_cast %287 : vector<16x32xf32> to vector<1x16x32xf32>
    tpu.vector_store %arg9[%c5_245, %c0_246, %c0_247], %290 {strides = array<i32>} : memref<8x16x32xf32, #tpu.memory_space<vmem>>, vector<1x16x32xf32>,
    %c6 = arith.constant 6 : index
    %c0_248 = arith.constant 0 : index
    %c0_249 = arith.constant 0 : index
    %291 = vector.load %arg1[%c6, %c0_248, %c0_249] : memref<8x16x32xf32, #tpu.memory_space<vmem>>, vector<1x16x32xf32>
    %292 = vector.shape_cast %291 : vector<1x16x32xf32> to vector<16x32xf32>
    %cst_250 = arith.constant dense<0.000000e+00> : vector<32x32xf32>
    %293 = tpu.matmul %0, %292, %cst_250 {dimension_numbers = #tpu.dot_dimension_numbers<[1], [0], [0], [1], [0, 0, 1, 1], [], []>} : vector<32x16xf32>, vector<16x32xf32>, vector<32x32xf32> -> vector<32x32xf32>
    %294 = vector.extract_strided_slice %293 {offsets = [0, 0], sizes = [16, 32], strides = [1, 1]} : vector<32x32xf32> to vector<16x32xf32>
    %c6_251 = arith.constant 6 : index
    %c0_252 = arith.constant 0 : index
    %c0_253 = arith.constant 0 : index
    %295 = vector.load %arg2[%c6_251, %c0_252, %c0_253] : memref<8x1x32xf32, #tpu.memory_space<vmem>>, vector<1x1x32xf32>
    %296 = vector.shape_cast %295 : vector<1x1x32xf32> to vector<1x32xf32>
    %297 = vector.broadcast %296 : vector<1x32xf32> to vector<16x32xf32>
    %298 = arith.mulf %294, %297 : vector<16x32xf32>
    %cst_254 = arith.constant 0.000000e+00 : f32
    %299 = vector.broadcast %cst_254 : f32 to vector<16x32xf32>
    %300 = arith.maximumf %298, %299 : vector<16x32xf32>
    %301 = vector.extract_strided_slice %293 {offsets = [16, 0], sizes = [16, 32], strides = [1, 1]} : vector<32x32xf32> to vector<16x32xf32>
    %c6_255 = arith.constant 6 : index
    %c0_256 = arith.constant 0 : index
    %c0_257 = arith.constant 0 : index
    %302 = vector.load %arg3[%c6_255, %c0_256, %c0_257] : memref<8x1x32xf32, #tpu.memory_space<vmem>>, vector<1x1x32xf32>
    %303 = vector.shape_cast %302 : vector<1x1x32xf32> to vector<1x32xf32>
    %304 = vector.broadcast %303 : vector<1x32xf32> to vector<16x32xf32>
    %305 = arith.mulf %301, %304 : vector<16x32xf32>
    %cst_258 = arith.constant 0.000000e+00 : f32
    %306 = vector.broadcast %cst_258 : f32 to vector<16x32xf32>
    %307 = arith.maximumf %305, %306 : vector<16x32xf32>
    %c0_259 = arith.constant 0 : index
    %c0_260 = arith.constant 0 : index
    %c0_261 = arith.constant 0 : index
    %308 = vector.load %arg6[%c0_259, %c0_260, %c0_261] : memref<3x32x32xf32, #tpu.memory_space<vmem>>, vector<1x32x32xf32>
    %309 = vector.shape_cast %308 : vector<1x32x32xf32> to vector<32x32xf32>
    %cst_262 = arith.constant dense<0.000000e+00> : vector<16x32xf32>
    %310 = tpu.matmul %300, %309, %cst_262 {dimension_numbers = #tpu.dot_dimension_numbers<[1], [0], [0], [1], [0, 0, 1, 1], [], []>} : vector<16x32xf32>, vector<32x32xf32>, vector<16x32xf32> -> vector<16x32xf32>
    %c0_263 = arith.constant 0 : index
    %c0_264 = arith.constant 0 : index
    %c0_265 = arith.constant 0 : index
    %311 = vector.load %arg7[%c0_263, %c0_264, %c0_265] : memref<3x32x32xf32, #tpu.memory_space<vmem>>, vector<1x32x32xf32>
    %312 = vector.shape_cast %311 : vector<1x32x32xf32> to vector<32x32xf32>
    %cst_266 = arith.constant dense<0.000000e+00> : vector<16x32xf32>
    %313 = tpu.matmul %307, %312, %cst_266 {dimension_numbers = #tpu.dot_dimension_numbers<[1], [0], [0], [1], [0, 0, 1, 1], [], []>} : vector<16x32xf32>, vector<32x32xf32>, vector<16x32xf32> -> vector<16x32xf32>
    %314 = arith.addf %310, %313 : vector<16x32xf32>
    %c1_i32_267 = arith.constant 1 : i32
    %315 = tpu.dynamic_rotate %314 by %c1_i32_267 dim 0 : vector<16x32xf32>, i32 -> vector<16x32xf32>
    %c1_268 = arith.constant 1 : index
    %c0_269 = arith.constant 0 : index
    %c0_270 = arith.constant 0 : index
    %316 = vector.load %arg6[%c1_268, %c0_269, %c0_270] : memref<3x32x32xf32, #tpu.memory_space<vmem>>, vector<1x32x32xf32>
    %317 = vector.shape_cast %316 : vector<1x32x32xf32> to vector<32x32xf32>
    %cst_271 = arith.constant dense<0.000000e+00> : vector<16x32xf32>
    %318 = tpu.matmul %300, %317, %cst_271 {dimension_numbers = #tpu.dot_dimension_numbers<[1], [0], [0], [1], [0, 0, 1, 1], [], []>} : vector<16x32xf32>, vector<32x32xf32>, vector<16x32xf32> -> vector<16x32xf32>
    %c1_272 = arith.constant 1 : index
    %c0_273 = arith.constant 0 : index
    %c0_274 = arith.constant 0 : index
    %319 = vector.load %arg7[%c1_272, %c0_273, %c0_274] : memref<3x32x32xf32, #tpu.memory_space<vmem>>, vector<1x32x32xf32>
    %320 = vector.shape_cast %319 : vector<1x32x32xf32> to vector<32x32xf32>
    %cst_275 = arith.constant dense<0.000000e+00> : vector<16x32xf32>
    %321 = tpu.matmul %307, %320, %cst_275 {dimension_numbers = #tpu.dot_dimension_numbers<[1], [0], [0], [1], [0, 0, 1, 1], [], []>} : vector<16x32xf32>, vector<32x32xf32>, vector<16x32xf32> -> vector<16x32xf32>
    %322 = arith.addf %318, %321 : vector<16x32xf32>
    %323 = arith.addf %315, %322 : vector<16x32xf32>
    %c2_276 = arith.constant 2 : index
    %c0_277 = arith.constant 0 : index
    %c0_278 = arith.constant 0 : index
    %324 = vector.load %arg6[%c2_276, %c0_277, %c0_278] : memref<3x32x32xf32, #tpu.memory_space<vmem>>, vector<1x32x32xf32>
    %325 = vector.shape_cast %324 : vector<1x32x32xf32> to vector<32x32xf32>
    %cst_279 = arith.constant dense<0.000000e+00> : vector<16x32xf32>
    %326 = tpu.matmul %300, %325, %cst_279 {dimension_numbers = #tpu.dot_dimension_numbers<[1], [0], [0], [1], [0, 0, 1, 1], [], []>} : vector<16x32xf32>, vector<32x32xf32>, vector<16x32xf32> -> vector<16x32xf32>
    %c2_280 = arith.constant 2 : index
    %c0_281 = arith.constant 0 : index
    %c0_282 = arith.constant 0 : index
    %327 = vector.load %arg7[%c2_280, %c0_281, %c0_282] : memref<3x32x32xf32, #tpu.memory_space<vmem>>, vector<1x32x32xf32>
    %328 = vector.shape_cast %327 : vector<1x32x32xf32> to vector<32x32xf32>
    %cst_283 = arith.constant dense<0.000000e+00> : vector<16x32xf32>
    %329 = tpu.matmul %307, %328, %cst_283 {dimension_numbers = #tpu.dot_dimension_numbers<[1], [0], [0], [1], [0, 0, 1, 1], [], []>} : vector<16x32xf32>, vector<32x32xf32>, vector<16x32xf32> -> vector<16x32xf32>
    %330 = arith.addf %326, %329 : vector<16x32xf32>
    %c15_i32_284 = arith.constant 15 : i32
    %331 = tpu.dynamic_rotate %330 by %c15_i32_284 dim 0 : vector<16x32xf32>, i32 -> vector<16x32xf32>
    %332 = arith.addf %323, %331 : vector<16x32xf32>
    %333 = vector.broadcast %2 : f32 to vector<16x32xf32>
    %334 = arith.addf %332, %333 : vector<16x32xf32>
    %cst_285 = arith.constant dense<0.000000e+00> : vector<16x32xf32>
    %335 = tpu.matmul %1, %334, %cst_285 {dimension_numbers = #tpu.dot_dimension_numbers<[1], [0], [0], [1], [0, 0, 1, 1], [], []>} : vector<16x16xf32>, vector<16x32xf32>, vector<16x32xf32> -> vector<16x32xf32>
    %c6_286 = arith.constant 6 : index
    %c0_287 = arith.constant 0 : index
    %c0_288 = arith.constant 0 : index
    %336 = vector.load %arg9[%c6_286, %c0_287, %c0_288] : memref<8x16x32xf32, #tpu.memory_space<vmem>>, vector<1x16x32xf32>
    %337 = vector.shape_cast %336 : vector<1x16x32xf32> to vector<16x32xf32>
    %338 = vector.shape_cast %335 : vector<16x32xf32> to vector<1x16x32xf32>
    tpu.vector_store %arg9[%c6_286, %c0_287, %c0_288], %338 {strides = array<i32>} : memref<8x16x32xf32, #tpu.memory_space<vmem>>, vector<1x16x32xf32>,
    %c7 = arith.constant 7 : index
    %c0_289 = arith.constant 0 : index
    %c0_290 = arith.constant 0 : index
    %339 = vector.load %arg1[%c7, %c0_289, %c0_290] : memref<8x16x32xf32, #tpu.memory_space<vmem>>, vector<1x16x32xf32>
    %340 = vector.shape_cast %339 : vector<1x16x32xf32> to vector<16x32xf32>
    %cst_291 = arith.constant dense<0.000000e+00> : vector<32x32xf32>
    %341 = tpu.matmul %0, %340, %cst_291 {dimension_numbers = #tpu.dot_dimension_numbers<[1], [0], [0], [1], [0, 0, 1, 1], [], []>} : vector<32x16xf32>, vector<16x32xf32>, vector<32x32xf32> -> vector<32x32xf32>
    %342 = vector.extract_strided_slice %341 {offsets = [0, 0], sizes = [16, 32], strides = [1, 1]} : vector<32x32xf32> to vector<16x32xf32>
    %c7_292 = arith.constant 7 : index
    %c0_293 = arith.constant 0 : index
    %c0_294 = arith.constant 0 : index
    %343 = vector.load %arg2[%c7_292, %c0_293, %c0_294] : memref<8x1x32xf32, #tpu.memory_space<vmem>>, vector<1x1x32xf32>
    %344 = vector.shape_cast %343 : vector<1x1x32xf32> to vector<1x32xf32>
    %345 = vector.broadcast %344 : vector<1x32xf32> to vector<16x32xf32>
    %346 = arith.mulf %342, %345 : vector<16x32xf32>
    %cst_295 = arith.constant 0.000000e+00 : f32
    %347 = vector.broadcast %cst_295 : f32 to vector<16x32xf32>
    %348 = arith.maximumf %346, %347 : vector<16x32xf32>
    %349 = vector.extract_strided_slice %341 {offsets = [16, 0], sizes = [16, 32], strides = [1, 1]} : vector<32x32xf32> to vector<16x32xf32>
    %c7_296 = arith.constant 7 : index
    %c0_297 = arith.constant 0 : index
    %c0_298 = arith.constant 0 : index
    %350 = vector.load %arg3[%c7_296, %c0_297, %c0_298] : memref<8x1x32xf32, #tpu.memory_space<vmem>>, vector<1x1x32xf32>
    %351 = vector.shape_cast %350 : vector<1x1x32xf32> to vector<1x32xf32>
    %352 = vector.broadcast %351 : vector<1x32xf32> to vector<16x32xf32>
    %353 = arith.mulf %349, %352 : vector<16x32xf32>
    %cst_299 = arith.constant 0.000000e+00 : f32
    %354 = vector.broadcast %cst_299 : f32 to vector<16x32xf32>
    %355 = arith.maximumf %353, %354 : vector<16x32xf32>
    %c0_300 = arith.constant 0 : index
    %c0_301 = arith.constant 0 : index
    %c0_302 = arith.constant 0 : index
    %356 = vector.load %arg6[%c0_300, %c0_301, %c0_302] : memref<3x32x32xf32, #tpu.memory_space<vmem>>, vector<1x32x32xf32>
    %357 = vector.shape_cast %356 : vector<1x32x32xf32> to vector<32x32xf32>
    %cst_303 = arith.constant dense<0.000000e+00> : vector<16x32xf32>
    %358 = tpu.matmul %348, %357, %cst_303 {dimension_numbers = #tpu.dot_dimension_numbers<[1], [0], [0], [1], [0, 0, 1, 1], [], []>} : vector<16x32xf32>, vector<32x32xf32>, vector<16x32xf32> -> vector<16x32xf32>
    %c0_304 = arith.constant 0 : index
    %c0_305 = arith.constant 0 : index
    %c0_306 = arith.constant 0 : index
    %359 = vector.load %arg7[%c0_304, %c0_305, %c0_306] : memref<3x32x32xf32, #tpu.memory_space<vmem>>, vector<1x32x32xf32>
    %360 = vector.shape_cast %359 : vector<1x32x32xf32> to vector<32x32xf32>
    %cst_307 = arith.constant dense<0.000000e+00> : vector<16x32xf32>
    %361 = tpu.matmul %355, %360, %cst_307 {dimension_numbers = #tpu.dot_dimension_numbers<[1], [0], [0], [1], [0, 0, 1, 1], [], []>} : vector<16x32xf32>, vector<32x32xf32>, vector<16x32xf32> -> vector<16x32xf32>
    %362 = arith.addf %358, %361 : vector<16x32xf32>
    %c1_i32_308 = arith.constant 1 : i32
    %363 = tpu.dynamic_rotate %362 by %c1_i32_308 dim 0 : vector<16x32xf32>, i32 -> vector<16x32xf32>
    %c1_309 = arith.constant 1 : index
    %c0_310 = arith.constant 0 : index
    %c0_311 = arith.constant 0 : index
    %364 = vector.load %arg6[%c1_309, %c0_310, %c0_311] : memref<3x32x32xf32, #tpu.memory_space<vmem>>, vector<1x32x32xf32>
    %365 = vector.shape_cast %364 : vector<1x32x32xf32> to vector<32x32xf32>
    %cst_312 = arith.constant dense<0.000000e+00> : vector<16x32xf32>
    %366 = tpu.matmul %348, %365, %cst_312 {dimension_numbers = #tpu.dot_dimension_numbers<[1], [0], [0], [1], [0, 0, 1, 1], [], []>} : vector<16x32xf32>, vector<32x32xf32>, vector<16x32xf32> -> vector<16x32xf32>
    %c1_313 = arith.constant 1 : index
    %c0_314 = arith.constant 0 : index
    %c0_315 = arith.constant 0 : index
    %367 = vector.load %arg7[%c1_313, %c0_314, %c0_315] : memref<3x32x32xf32, #tpu.memory_space<vmem>>, vector<1x32x32xf32>
    %368 = vector.shape_cast %367 : vector<1x32x32xf32> to vector<32x32xf32>
    %cst_316 = arith.constant dense<0.000000e+00> : vector<16x32xf32>
    %369 = tpu.matmul %355, %368, %cst_316 {dimension_numbers = #tpu.dot_dimension_numbers<[1], [0], [0], [1], [0, 0, 1, 1], [], []>} : vector<16x32xf32>, vector<32x32xf32>, vector<16x32xf32> -> vector<16x32xf32>
    %370 = arith.addf %366, %369 : vector<16x32xf32>
    %371 = arith.addf %363, %370 : vector<16x32xf32>
    %c2_317 = arith.constant 2 : index
    %c0_318 = arith.constant 0 : index
    %c0_319 = arith.constant 0 : index
    %372 = vector.load %arg6[%c2_317, %c0_318, %c0_319] : memref<3x32x32xf32, #tpu.memory_space<vmem>>, vector<1x32x32xf32>
    %373 = vector.shape_cast %372 : vector<1x32x32xf32> to vector<32x32xf32>
    %cst_320 = arith.constant dense<0.000000e+00> : vector<16x32xf32>
    %374 = tpu.matmul %348, %373, %cst_320 {dimension_numbers = #tpu.dot_dimension_numbers<[1], [0], [0], [1], [0, 0, 1, 1], [], []>} : vector<16x32xf32>, vector<32x32xf32>, vector<16x32xf32> -> vector<16x32xf32>
    %c2_321 = arith.constant 2 : index
    %c0_322 = arith.constant 0 : index
    %c0_323 = arith.constant 0 : index
    %375 = vector.load %arg7[%c2_321, %c0_322, %c0_323] : memref<3x32x32xf32, #tpu.memory_space<vmem>>, vector<1x32x32xf32>
    %376 = vector.shape_cast %375 : vector<1x32x32xf32> to vector<32x32xf32>
    %cst_324 = arith.constant dense<0.000000e+00> : vector<16x32xf32>
    %377 = tpu.matmul %355, %376, %cst_324 {dimension_numbers = #tpu.dot_dimension_numbers<[1], [0], [0], [1], [0, 0, 1, 1], [], []>} : vector<16x32xf32>, vector<32x32xf32>, vector<16x32xf32> -> vector<16x32xf32>
    %378 = arith.addf %374, %377 : vector<16x32xf32>
    %c15_i32_325 = arith.constant 15 : i32
    %379 = tpu.dynamic_rotate %378 by %c15_i32_325 dim 0 : vector<16x32xf32>, i32 -> vector<16x32xf32>
    %380 = arith.addf %371, %379 : vector<16x32xf32>
    %381 = vector.broadcast %2 : f32 to vector<16x32xf32>
    %382 = arith.addf %380, %381 : vector<16x32xf32>
    %cst_326 = arith.constant dense<0.000000e+00> : vector<16x32xf32>
    %383 = tpu.matmul %1, %382, %cst_326 {dimension_numbers = #tpu.dot_dimension_numbers<[1], [0], [0], [1], [0, 0, 1, 1], [], []>} : vector<16x16xf32>, vector<16x32xf32>, vector<16x32xf32> -> vector<16x32xf32>
    %c7_327 = arith.constant 7 : index
    %c0_328 = arith.constant 0 : index
    %c0_329 = arith.constant 0 : index
    %384 = vector.load %arg9[%c7_327, %c0_328, %c0_329] : memref<8x16x32xf32, #tpu.memory_space<vmem>>, vector<1x16x32xf32>
    %385 = vector.shape_cast %384 : vector<1x16x32xf32> to vector<16x32xf32>
    %386 = vector.shape_cast %383 : vector<16x32xf32> to vector<1x16x32xf32>
    tpu.vector_store %arg9[%c7_327, %c0_328, %c0_329], %386 {strides = array<i32>} : memref<8x16x32xf32, #tpu.memory_space<vmem>>, vector<1x16x32xf32>,
    return
  }
  func.func @transform_0(%arg0: i32) -> (i32, i32, i32) {
    %c0_i32 = arith.constant 0 : i32
    %c0_i32_0 = arith.constant 0 : i32
    %c0_i32_1 = arith.constant 0 : i32
    return %arg0, %c0_i32, %c0_i32_0 : i32, i32, i32
  }
  func.func @transform_1(%arg0: i32) -> (i32, i32, i32) {
    %c0_i32 = arith.constant 0 : i32
    %c0_i32_0 = arith.constant 0 : i32
    %c0_i32_1 = arith.constant 0 : i32
    return %arg0, %c0_i32, %c0_i32_0 : i32, i32, i32
  }
  func.func @transform_2(%arg0: i32) -> (i32, i32, i32) {
    %c0_i32 = arith.constant 0 : i32
    %c0_i32_0 = arith.constant 0 : i32
    %c0_i32_1 = arith.constant 0 : i32
    return %arg0, %c0_i32, %c0_i32_0 : i32, i32, i32
  }
  func.func @transform_3(%arg0: i32) -> (i32, i32) {
    %c0_i32 = arith.constant 0 : i32
    %c0_i32_0 = arith.constant 0 : i32
    %c0_i32_1 = arith.constant 0 : i32
    return %c0_i32, %c0_i32_0 : i32, i32
  }
  func.func @transform_4(%arg0: i32) -> (i32, i32) {
    %c0_i32 = arith.constant 0 : i32
    %c0_i32_0 = arith.constant 0 : i32
    %c0_i32_1 = arith.constant 0 : i32
    return %c0_i32, %c0_i32_0 : i32, i32
  }
  func.func @transform_5(%arg0: i32) -> (i32, i32, i32) {
    %c0_i32 = arith.constant 0 : i32
    %c0_i32_0 = arith.constant 0 : i32
    %c0_i32_1 = arith.constant 0 : i32
    %c0_i32_2 = arith.constant 0 : i32
    return %c0_i32, %c0_i32_0, %c0_i32_1 : i32, i32, i32
  }
  func.func @transform_6(%arg0: i32) -> (i32, i32, i32) {
    %c0_i32 = arith.constant 0 : i32
    %c0_i32_0 = arith.constant 0 : i32
    %c0_i32_1 = arith.constant 0 : i32
    %c0_i32_2 = arith.constant 0 : i32
    return %c0_i32, %c0_i32_0, %c0_i32_1 : i32, i32, i32
  }
  func.func @transform_7(%arg0: i32) -> i32 {
    %c0_i32 = arith.constant 0 : i32
    %c0_i32_0 = arith.constant 0 : i32
    return %c0_i32 : i32
  }
  func.func @transform_8(%arg0: i32) -> (i32, i32, i32) {
    %c0_i32 = arith.constant 0 : i32
    %c0_i32_0 = arith.constant 0 : i32
    %c0_i32_1 = arith.constant 0 : i32
    return %arg0, %c0_i32, %c0_i32_0 : i32, i32, i32
  }
}

</mosaic_0001>

<bundles_post_ra>
// kernel: tpu_custom_call.1
= control target key start
LH: loop header
LB: loop body
LE: loop exit
PB: predicated region body
PF: predicated region fallthrough
CT: control target
= control target key end

     0   :  { %s9024_s0 = inlined_call_operand.hbm [shape: f32[16,16,32], index: 0, kind: input, shape index: {}]   ;;  %s9025_s1 = inlined_call_operand.vmem [shape: f32[16,1,32], index: 1, kind: input, shape index: {}]   ;;  %s9026_s2 = inlined_call_operand.vmem [shape: f32[16,1,32], index: 2, kind: input, shape index: {}]   ;;  %s9027_s3 = inlined_call_operand.vmem [shape: f32[32,16], index: 3, kind: input, shape index: {}]   ;;  %s9028_s4 = inlined_call_operand.vmem [shape: f32[16,16], index: 4, kind: input, shape index: {}]   ;;  %s9029_s5 = inlined_call_operand.hbm [shape: f32[3,32,32], index: 5, kind: input, shape index: {}]   ;;  %s9030_s6 = inlined_call_operand.hbm [shape: f32[3,32,32], index: 6, kind: input, shape index: {}]   ;;  %s9031_s7 = inlined_call_operand.<no memory space> [shape: f32[1], index: 7, kind: input, shape index: {}]   ;;  %s9032_s8 = inlined_call_operand.hbm [shape: f32[16,16,32], index: 8, kind: output, shape index: {}]  }
   0x1   :  { %13 = sst [smem:[#allocation2]] %s9031_s7 }
   0x2   :  { %14 = vsyncpa [#allocation4], 0 }
   0x3   :  { %16 = vsyncpa [#allocation4 + $0x1], 0 }
   0x4   :  { %17 = vsyncpa [#allocation7], 0 }
   0x5   :  { %18 = vsyncpa [#allocation5], 0 }
   0x6   :  { %20 = vsyncpa [#allocation5 + $0x1], 0  ;;  %s8119_s29 = smov 0   ;;  %s8121_s30 = smov 0  }
   0x7   :  { %s8123_s9 = smov 0   ;;  %s8125_s10 = smov 0  }
   0x8 LB: > { %s8140_s7 = sadd.s32 4294967295, %s8061_s10   ;;  %s6072_s11 = sadd.s32 4294967294, %s8061_s10   ;;  %s8061_s10 = sphi %s8125_s10, %s9054_s10   ;;  %s8057_s9 = sphi %s8123_s9, %s9053_s9   ;;  %s8053_s30 = sphi %s8121_s30, %s9052_s30   ;;  %s8049_s29 = sphi %s8119_s29, %s9051_s29  }
   0x9   : > { %p46_p0 = scmp.ne.s32.totalorder %s8053_s30, %s8049_s29  ;;  %p9033_p1 = scmp.eq.s32.totalorder %s8140_s7, 0 }
   0xa   : > { %p233_p3 = scmp.eq.s32.totalorder %s6072_s11, 1  ;;  %p6073_p5 = scmp.ge.s32.totalorder %s8061_s10, 1 }
   0xb   : > { %p8149_p4 = por %p9033_p1, %p46_p0  ;;  %p240_p7 = scmp.lt.s32.totalorder %s8061_s10, 3 }
   0xc   : > { %p8154_p6 = por %p233_p3, %p46_p0  ;;  %s8063_s15 = smov [#allocation6]  }
   0xd   : > { %s9037_s12 = scalar_select %p8149_p4, 1, 0 }
   0xe   : > { %s9038_s13 = scalar_select %p8154_p6, 1, 0 }
   0xf   : > { %p8159_p8 = pnand %p6073_p5, %p240_p7  ;;  %s258_s16 = sshll.u32 %s8063_s15, 4  ;;  %s8163_s16 = int_to_ptr.vmem [resolvable:$true] %s258_s16 }
  0x10   : > { %s8064_s18 = smov [#allocation8]   ;;  %s7905_s22 = scalar_lea.hbm %s9029_s5, 1536 }
  0x11   : > { %p7840_p9 = pneg %p8159_p8  ;;  %s271_s19 = sshll.u32 %s8064_s18, 4  ;;  %s8174_s19 = int_to_ptr.vmem [resolvable:$true] %s271_s19 }
  0x12   : > { %p7906_p12 = scmp.ne.s32.totalorder %s9029_s5, %s7905_s22  ;;  %p7912_p5 = scmp.lt.u32.totalorder %s7905_s22, %s9029_s5 }
  0x13   : > { %p8170_p11 = pnand %p7840_p9, %p9033_p1 }
  0x15   : > { %p7907_p13 = pneg %p8170_p11 }
  0x17   : > { %p7908_p0 = pnand %p7907_p13, %p7906_p12 }
  0x19   : > { %p7909_p3 = pneg %p7908_p0 }
  0x1b   : > { %p7914_p7 = pnand %p7912_p5, %p7909_p3 }
  0x1d   : > { %7917 = shalt.err (!%p7914_p7)
}
  0x1e   : > { %s7918_s27 = scalar_lea.vmem %s8163_s16, 1536  ;;  %p7926_p2 = scmp.lt.s32.totalorder %s8163_s16, %s8163_s16 }
  0x1f   : > { %p7919_p9 = scmp.ne.s32.totalorder %s8163_s16, %s7918_s27  ;;  %p7927_p12 = scmp.lt.s32.totalorder %s7918_s27, %s7918_s27 }
  0x21   : > { %p7921_p10 = pnand %p7919_p9, %p7907_p13  ;;  %p7928_p0 = por %p7927_p12, %p7926_p2 }
  0x23   : > { %p7922_p1 = pneg %p7921_p10 }
  0x25   : > { %p7929_p6 = pnand %p7928_p0, %p7922_p1 }
  0x27   : > { %7932 = shalt.err (!%p7929_p6)
}
  0x28   : > { %s9034_s28 = smov 128   ;;  %s8066_s11 = smov 8  }
  0x29   : > { %7843 = dma.hbm_to_vmem [thread:$0]  (!%p8170_p11), %s9029_s5, 1536, %s8163_s16, [#allocation7], %s9034_s28, %s9034_s28, %s8066_s11  }
  0x2a   : > { %s7933_s22 = scalar_lea.hbm %s9030_s6, 1536 }
  0x2b   : > { %p7934_p1 = scmp.ne.s32.totalorder %s9030_s6, %s7933_s22  ;;  %p7940_p10 = scmp.lt.u32.totalorder %s7933_s22, %s9030_s6 }
  0x2d   : > { %p7936_p2 = pnand %p7934_p1, %p7907_p13 }
  0x2f   : > { %p7937_p6 = pneg %p7936_p2 }
  0x31   : > { %p7942_p3 = pnand %p7940_p10, %p7937_p6 }
  0x33   : > { %7945 = shalt.err (!%p7942_p3)
}
  0x34   : > { %s7946_s16 = scalar_lea.vmem %s8174_s19, 1536  ;;  %p7954_p12 = scmp.lt.s32.totalorder %s8174_s19, %s8174_s19 }
  0x35   : > { %p7947_p5 = scmp.ne.s32.totalorder %s8174_s19, %s7946_s16  ;;  %p7955_p0 = scmp.lt.s32.totalorder %s7946_s16, %s7946_s16 }
  0x37   : > { %p7949_p7 = pnand %p7947_p5, %p7907_p13  ;;  %p7956_p1 = por %p7955_p0, %p7954_p12 }
  0x39   : > { %p7950_p9 = pneg %p7949_p7 }
  0x3b   : > { %p7957_p2 = pnand %p7956_p1, %p7950_p9 }
  0x3d   : > { %7960 = shalt.err (!%p7957_p2)
}
  0x3e   : > { %7846 = dma.hbm_to_vmem [thread:$0]  (!%p8170_p11), %s9030_s6, 1536, %s8174_s19, [#allocation7], %s9034_s28, %s9034_s28, %s8066_s11  }
  0x3f   : > { %s8235_s17 = sadd.s32 1, %s8061_s10   ;;  %s33_s18 = sadd.s32 1, %s8057_s9 }
  0x40   : > { %s30_s20 = ssub.s32 %s8061_s10, %s8235_s17  ;;  %p40_p13 = scmp.ne.s32.totalorder %s8057_s9, %s8053_s30 }
  0x41   : > { %p31_p6 = scmp.eq.s32.totalorder %s30_s20, 0  ;;  %p41_p10 = scmp.eq.s32.totalorder %s8061_s10, 0 }
  0x42   : > { %p9041_p3 = scmp.eq.s32.totalorder %s8140_s7, 1  ;;  %p7857_p7 = scmp.lt.s32.totalorder %s8061_s10, 2 }
  0x43   : > { %s8251_s22 = scalar_select %p31_p6, %s8057_s9, %s33_s18  }
  0x44   : > { %p8245_p5 = por %p9041_p3, %p40_p13  ;;  %p42_p9 = por %p41_p10, %p40_p13 }
  0x45   : > { %s288_s23 = sand.u32 1, %s8057_s9   ;;  %s6297_s19 = sshll.u32 %s8061_s10, 11 }
  0x46   : > { %s9042_s21 = scalar_select %p8245_p5, 1, 0 }
  0x47   : > { %s6077_s24 = sshll.u32 %s288_s23, 7  ;;  %s8258_s16 = scalar_lea.hbm %s9024_s0, %s6297_s19 }
  0x48   : > { %s292_s27 = scalar_lea.vmem [#allocation3], %s6077_s24  ;;  %p8262_p11 = pnand %p7857_p7, %p42_p9 }
  0x49   : > { %s300_s15 = sshll.u32 %s292_s27, 4  ;;  %s8266_s20 = scalar_lea.sflag [#allocation4], %s288_s23  ;;  %s8260_s15 = int_to_ptr.vmem [resolvable:$true] %s300_s15 }
  0x4a   : > { %s7961_s28 = scalar_lea.hbm %s8258_s16, 2048  ;;  %p7963_p0 = pneg %p8262_p11 }
  0x4b   : > { %p7962_p12 = scmp.ne.s32.totalorder %s8258_s16, %s7961_s28  ;;  %s7966_s25 = scalar_lea.hbm %s9024_s0, 4096 }
  0x4c   : > { %p7967_p13 = scmp.lt.u32.totalorder %s8258_s16, %s9024_s0  ;;  %p7968_p6 = scmp.lt.u32.totalorder %s7966_s25, %s7961_s28 }
  0x4d   : > { %p7964_p1 = pnand %p7963_p0, %p7962_p12  ;;  %p7970_p3 = scmp.lt.u32.totalorder %s7961_s28, %s8258_s16 }
  0x4e   : > { %p7969_p10 = por %p7968_p6, %p7967_p13 }
  0x4f   : > { %p7965_p2 = pneg %p7964_p1 }
  0x50   : > { %p7971_p7 = por %p7970_p3, %p7969_p10 }
  0x52   : > { %p7972_p9 = pnand %p7971_p7, %p7965_p2 }
  0x54   : > { %7975 = shalt.err (!%p7972_p9)
}
  0x55   : > { %s7976_s23 = scalar_lea.vmem %s8260_s15, 2048  ;;  %s8067_s24 = smov [#allocation3]  }
  0x56   : > { %p7977_p12 = scmp.ne.s32.totalorder %s8260_s15, %s7976_s23  ;;  %s7981_s19 = sshll.u32 %s8067_s24, 4  ;;  %s7982_s19 = int_to_ptr.vmem [resolvable:$false] %s7981_s19 }
  0x57   : > { %s7983_s26 = scalar_lea.vmem %s7982_s19, 4096  ;;  %p7984_p4 = scmp.lt.s32.totalorder %s8260_s15, %s7982_s19 }
  0x58   : > { %p7979_p1 = pnand %p7977_p12, %p7963_p0  ;;  %p7985_p13 = scmp.lt.s32.totalorder %s7983_s26, %s7976_s23 }
  0x5a   : > { %p7980_p5 = pneg %p7979_p1  ;;  %p7986_p6 = por %p7985_p13, %p7984_p4 }
  0x5c   : > { %p7987_p10 = pnand %p7986_p6, %p7980_p5 }
  0x5e   : > { %7990 = shalt.err (!%p7987_p10)
}
  0x5f   : > { %s9044_s28 = smov 128   ;;  %328 = sbr.rel (%p8159_p8) target bundleno = 4145 (0x1031), region = 52 }
  0x60   : > { %7850 = dma.hbm_to_vmem [thread:$0]  (!%p8262_p11), %s8258_s16, 2048, %s8260_s15, %s8266_s20, %s9044_s28, %s9044_s28, %s8066_s11  }
  0x61   : > { %s8300_s25 = sand.u32 (!%p8159_p8), 1, %s8053_s30   ;;  %p9045_p4 = scmp.ne.s32.totalorder (!%p8159_p8), %s9037_s12, 0 }
  0x62   : > { %s6082_s27 = sshll.u32 (!%p8159_p8), %s8300_s25, 7  ;;  %s331_s23 = scalar_lea.sflag (!%p8159_p8), [#allocation4], %s8300_s25 }
  0x63   : > { %s8306_s18 = scalar_lea.vmem (!%p8159_p8), [#allocation3], %s6082_s27 }
  0x66   : > { %8036 = dma.done.wait (%p9045_p4), %s331_s23, 2048  }
  0x67   : > { %8038 = vsyncadd (%p9045_p4), %s331_s23, 4294965248  ;;  %p9046_p5 = scmp.eq.s32.totalorder %s8140_s7, 0 }
  0x69   : > { %8040 = dma.done.wait (%p9046_p5), [#allocation7], 3072   ;;  %p9047_p8 = pmov %p9046_p5 }
  0x6a   : > { %vm404_vm0 = vcmask 130048   ;;  %v402_v0 = vld [vmem:[%s8306_s18] sm:$0xff]  ;;  %v403_v1 = vld [vmem:[%s8306_s18 + $0x8] sm:$0xff]  ;;  %v8333_v5 = vld [vmem:[%s9027_s3 + $0x10] sm:$0xff]  ;;  %s6086_s26 = sshll.u32 %s8140_s7, 3  ;;  %vm532_vm1 = vcmask 261120   ;;  %v697_v58 = vlaneseq }
  0x6b   : > { %8042 = vsyncadd (%p9047_p8), [#allocation7], 4294964224  ;;  %v8321_v2 = vld [vmem:[%s9027_s3] sm:$0xff]  ;;  %v7332_v3 = vpack.c.bf16 %v403_v1, %v402_v0  ;;  %v8328_v4 = vld [vmem:[%s9027_s3 + $0x8] sm:$0xff]  ;;  %p385_p11 = scmp.lt.s32.totalorder %s6086_s26, 15  ;;  %s401_s24 = sld [smem:[#allocation2]] }
  0x6c   : > { %6672 = vmatprep.mubr.msk.f32.mxu1 %vm404_vm0, %v8321_v2  ;;  %v8342_v6 = vld [vmem:[%s9027_s3 + $0x18] sm:$0xff]  ;;  %v528_v7 = vld [vmem:[#allocation8] sm:$0xff]  ;;  %v529_v8 = vld [vmem:[#allocation8 + $0x8] sm:$0xff]  ;;  %v8431_v59 = vshrl.u32 %v697_v58, 7  ;;  %s8471_s28 = scalar_lea.vmem [#allocation9], %s6082_s27  ;;  %s5948_s20 = scalar_lea.sflag [#allocation5], %s8300_s25 }
  0x6d   : > { %7333 = vmatprep.subr.bf16.mxu1 %v7332_v3  ;;  %v8346_v9 = vpack.c.bf16 %v529_v8, %v528_v7  ;;  %v708_v10 = vld [vmem:[#allocation8 + $0x20] sm:$0xff]  ;;  %v709_v11 = vld [vmem:[#allocation8 + $0x28] sm:$0xff]  ;;  %v530_v13 = vld [vmem:[#allocation8 + $0x10] sm:$0xff]  ;;  %s9056_s26 = smov (!%p385_p11, %s6086_s26), 15  ;;  %p9048_p2 = scmp.ne.s32.totalorder %s9042_s21, 0 }
  0x6e   : > { %7335 = vmatpush3.bf16.msra.mxu1 %v7332_v3  ;;  %v8348_v12 = vpack.c.bf16 %v709_v11, %v708_v10  ;;  %v531_v14 = vld [vmem:[#allocation8 + $0x18] sm:$0xff]  ;;  %v710_v16 = vld [vmem:[#allocation8 + $0x30] sm:$0xff]  ;;  %v524_v19 = vld [vmem:[#allocation6] sm:$0xff]  ;;  %s8372_s14 = scalar_lea.vmem %s9026_s2, %s9056_s26  ;;  %s8377_s16 = scalar_lea.vmem %s9025_s1, %s9056_s26  ;;  %vm699_vm2 = vcmp.lt.s32.totalorder %v8431_v59, 1  ;;  %vm1026_vm3 = vcmp.lt.s32.totalorder %v8431_v59, 7 }
  0x6f   : > { %7337 = vmatprep.subr.bf16.mxu1 %v8346_v9  ;;  %v8354_v15 = vpack.c.bf16 %v531_v14, %v530_v13  ;;  %v711_v17 = vld [vmem:[#allocation8 + $0x38] sm:$0xff]  ;;  %v525_v20 = vld [vmem:[#allocation6 + $0x8] sm:$0xff]  ;;  %v703_v22 = vld [vmem:[#allocation6 + $0x20] sm:$0xff] }
  0x70   : > { %7353 = vmatprep.subr.bf16.mxu0 %v8348_v12  ;;  %v8356_v18 = vpack.c.bf16 %v711_v17, %v710_v16  ;;  %v8362_v21 = vpack.c.bf16 %v525_v20, %v524_v19  ;;  %v704_v23 = vld [vmem:[#allocation6 + $0x28] sm:$0xff]  ;;  %v6093_v27 = vld [vmem:[%s8372_s14] ss:$0 sm:$0xff]  ;;  %v526_v34 = vld [vmem:[#allocation6 + $0x10] sm:$0xff] }
  0x71   : > { %6673 = vmatmul.mubr.msk.f32.vlgmr.msra.gmra.mrb[0].mxu1 %vm404_vm0, %v8328_v4  ;;  %7355 = vmatpush3.bf16.msra.mxu0 %v8348_v12  ;;  %v8365_v24 = vpack.c.bf16 %v704_v23, %v703_v22  ;;  %v6092_v28 = vld [vmem:[%s8377_s16] ss:$0 sm:$0xff]  ;;  %v527_v35 = vld [vmem:[#allocation6 + $0x18] sm:$0xff]  ;;  %v705_v36 = vld [vmem:[#allocation6 + $0x30] sm:$0xff]  ;;  %v8443_v20 = vstv %s401_s24 }
  0x72   : > { %6675 = vmatprep.mubr.msk.f32.mxu1 %vm404_vm0, %v8333_v5  ;;  %7339 = vmatpush3.bf16.msra.mxu1 %v8346_v9  ;;  %v706_v37 = vld [vmem:[#allocation6 + $0x38] sm:$0xff]  ;;  %v8383_v41 = vpack.c.bf16 %v527_v35, %v526_v34  ;;  %v870_v43 = vld [vmem:[#allocation8 + $0x40] sm:$0xff]  ;;  %v871_v44 = vld [vmem:[#allocation8 + $0x48] sm:$0xff] }
  0x73   : > { %7341 = vmatprep.subr.bf16.mxu1 %v8354_v15  ;;  %7357 = vmatprep.subr.bf16.mxu0 %v8356_v18  ;;  %v8385_v42 = vpack.c.bf16 %v706_v37, %v705_v36  ;;  %v8393_v46 = vpack.c.bf16 %v871_v44, %v870_v43  ;;  %v872_v47 = vld [vmem:[#allocation8 + $0x50] sm:$0xff]  ;;  %v873_v48 = vld [vmem:[#allocation8 + $0x58] sm:$0xff]  ;;  %v865_v51 = vld [vmem:[#allocation6 + $0x40] sm:$0xff] }
  0x74   : > { %v8400_v50 = vpack.c.bf16 %v873_v48, %v872_v47  ;;  %v866_v52 = vld [vmem:[#allocation6 + $0x48] sm:$0xff]  ;;  %v867_v54 = vld [vmem:[#allocation6 + $0x50] sm:$0xff]  ;;  %v868_v55 = vld [vmem:[#allocation6 + $0x58] sm:$0xff] }
  0x75   : > { %6676 = vmatmul.mubr.msk.f32.gmra.mrb[2].mxu1 %vm404_vm0, %v8342_v6  ;;  %7359 = vmatpush3.bf16.msra.mxu0 %v8356_v18  ;;  %v8407_v53 = vpack.c.bf16 %v866_v52, %v865_v51  ;;  %v8411_v56 = vpack.c.bf16 %v868_v55, %v867_v54  ;;  %v8427_v57 = vld [vmem:[%s9028_s4] sm:$0xff] }
  0x76   : > { %7343 = vmatpush3.bf16.msra.mxu1 %v8354_v15  ;;  %7361 = vmatprep.subr.bf16.mxu0 %v8365_v24  ;;  %v6117_v36 = vld [vmem:[%s8372_s14 + $0x1] ss:$0 sm:$0xff] }
  0x77   : > { %7345 = vmatprep.subr.bf16.mxu1 %v8362_v21  ;;  %v6115_v37 = vld [vmem:[%s8377_s16 + $0x1] ss:$0 sm:$0xff] }
 0x144   : > { %v6674_v25 = vpop.f32.mrb[0].mxu1 }
 0x145   : > { %v483_v26 = vpop.f32.mrb[1].mxu1  ;;  %v510_v45 = vmul.f32 %v6674_v25, %v6092_v28  ;;  %v6108_v25 = vld [vmem:[%s8306_s18 + $0x10] sm:$0xff] }
 0x146   : > { %v509_v32 = vmul.f32 %v6092_v28, %v483_v26  ;;  %v6109_v26 = vld [vmem:[%s8306_s18 + $0x18] sm:$0xff] }
 0x147   : > { %v512_v49 = vmax.f32 %v510_v45, 0.0 }
 0x148   : > { %v6677_v29 = vpop.f32.mrb[2].mxu1  ;;  %v511_v40 = vmax.f32 %v509_v32, 0.0 }
 0x149   : > { %v521_v30 = vmul.f32 %v6677_v29, %v6093_v27  ;;  %v493_v31 = vpop.f32.mrb[3].mxu1 }
 0x14a   : > { %v520_v33 = vmul.f32 %v6093_v27, %v493_v31  ;;  %v8452_v31 = vld [vmem:[%s9028_s4 + $0x8] sm:$0xff] }
 0x14b   : > { %v523_v39 = vmax.f32 %v521_v30, 0.0  ;;  %v7388_v30 = vpack.c.bf16 %v6109_v26, %v6108_v25 }
 0x14c   : > { %v522_v38 = vmax.f32 %v520_v33, 0.0 }
 0x14e   : > { %6686 = vmatprep.mubr.msk.f32.mxu1 %vm532_vm1, %v522_v38  ;;  %6708 = vmatprep.mubr.msk.f32.mxu0 %vm532_vm1, %v522_v38 }
 0x14f   : > { %6687 = vmatmul.mubr.msk.f32.vlgmr.msra.gmra.mrb[4].mxu1 %vm532_vm1, %v523_v39  ;;  %6709 = vmatmul.mubr.msk.f32.vlgmr.msra.gmra.mrb[0].mxu0 %vm532_vm1, %v523_v39 }
 0x150   : > { %7347 = vmatpush3.bf16.msra.mxu1 %v8362_v21  ;;  %6697 = vmatprep.mubr.msk.f32.mxu1 %vm532_vm1, %v511_v40 }
 0x151   : > { %7363 = vmatpush3.bf16.msra.mxu0 %v8365_v24  ;;  %6719 = vmatprep.mubr.msk.f32.mxu0 %vm532_vm1, %v511_v40 }
 0x152   : > { %7349 = vmatprep.subr.bf16.mxu1 %v8383_v41  ;;  %7365 = vmatprep.subr.bf16.mxu0 %v8385_v42 }
 0x154   : > { %7351 = vmatpush3.bf16.msra.mxu1 %v8383_v41 }
 0x155   : > { %7367 = vmatpush3.bf16.msra.mxu0 %v8385_v42  ;;  %7369 = vmatprep.subr.bf16.mxu1 %v8393_v46 }
 0x157   : > { %6698 = vmatmul.mubr.msk.f32.vlgmr.msra.gmra.mrb[4].mxu1 %vm532_vm1, %v512_v49 }
 0x158   : > { %6720 = vmatmul.mubr.msk.f32.vlgmr.msra.gmra.mrb[0].mxu0 %vm532_vm1, %v512_v49  ;;  %7371 = vmatpush3.bf16.msra.mxu1 %v8393_v46 }
 0x159   : > { %6730 = vmatprep.mubr.msk.f32.mxu1 %vm532_vm1, %v522_v38  ;;  %7373 = vmatprep.subr.bf16.mxu1 %v8400_v50 }
 0x15a   : > { %6748 = vmatprep.mubr.msk.f32.mxu0 %vm404_vm0, %v8427_v57 }
 0x15c   : > { %7375 = vmatpush3.bf16.msra.mxu1 %v8400_v50 }
 0x15d   : > { %7377 = vmatprep.subr.bf16.mxu1 %v8407_v53 }
 0x15f   : > { %6731 = vmatmul.mubr.msk.f32.vlgmr.msra.gmra.mrb[6].mxu1 %vm532_vm1, %v523_v39 }
 0x160   : > { %7379 = vmatpush3.bf16.msra.mxu1 %v8407_v53  ;;  %6741 = vmatprep.mubr.msk.f32.mxu1 %vm532_vm1, %v511_v40 }
 0x161   : > { %7381 = vmatprep.subr.bf16.mxu1 %v8411_v56 }
 0x164   : > { %7383 = vmatpush3.bf16.msra.mxu1 %v8411_v56 }
 0x165   : > { %7409 = vmatprep.subr.bf16.mxu1 %v8348_v12 }
 0x167   : > { %6742 = vmatmul.mubr.msk.f32.vlgmr.msra.gmra.mrb[6].mxu1 %vm532_vm1, %v512_v49 }
 0x168   : > { %7411 = vmatpush3.bf16.msra.mxu1 %v8348_v12 }
 0x169   : > { %7413 = vmatprep.subr.bf16.mxu1 %v8356_v18 }
 0x16c   : > { %7415 = vmatpush3.bf16.msra.mxu1 %v8356_v18 }
 0x16d   : > { %7417 = vmatprep.subr.bf16.mxu1 %v8365_v24 }
 0x22a   : > { %v6699_v60 = vpop.f32.mrb[4].mxu1 }
 0x22b   : > { %v696_v61 = vrot.slane %v6699_v60, 7  ;;  %v6721_v62 = vpop.f32.mrb[0].mxu0  ;;  %v686_v63 = vpop.f32.mrb[5].mxu1 }
 0x22c   : > { %v695_v0 = vrot.slane %v686_v63, 7  ;;  %v853_v1 = vpop.f32.mrb[1].mxu0 }
 0x22e   : > { %v700_v3 = vsel %vm699_vm2, %v695_v0, %v696_v61  ;;  %v701_v7 = vsel %vm699_vm2, %v696_v61, %v695_v0 }
 0x22f   : > { %v863_v8 = vadd.f32 %v6721_v62, %v700_v3  ;;  %v862_v10 = vadd.f32 %v853_v1, %v701_v7 }
 0x23a   : > { %v6743_v11 = vpop.f32.mrb[6].mxu1 }
 0x23b   : > { %v1025_v13 = vrot.slane %v6743_v11, 1  ;;  %v1015_v14 = vpop.f32.mrb[7].mxu1 }
 0x23c   : > { %v1024_v16 = vrot.slane %v1015_v14, 1 }
 0x23e   : > { %v1027_v17 = vsel %vm1026_vm3, %v1024_v16, %v1025_v13  ;;  %v1028_v19 = vsel %vm1026_vm3, %v1025_v13, %v1024_v16 }
 0x23f   : > { %v1029_v22 = vadd.f32 %v1027_v17, %v862_v10  ;;  %v1030_v23 = vadd.f32 %v1028_v19, %v863_v8  ;;  %v6134_v17 = vld [vmem:[%s8306_s18 + $0x20] sm:$0xff]  ;;  %v6135_v19 = vld [vmem:[%s8306_s18 + $0x28] sm:$0xff] }
 0x240   : > { %v7444_v26 = vpack.c.bf16 %v6135_v19, %v6134_v17 }
 0x241   : > { %v1032_v27 = vadd.f32 %v8443_v20, %v1029_v22  ;;  %v1033_v28 = vadd.f32 %v8443_v20, %v1030_v23 }
 0x243   : > { %v7384_v29 = vpack.c.bf16 %v1033_v28, %v1032_v27 }
 0x245   : > { %7385 = vmatprep.subr.bf16.mxu0 %v7384_v29 }
 0x246   : > { %7387 = vmatpush3.bf16.msra.mxu0 %v7384_v29 }
 0x247   : > { %7389 = vmatprep.subr.bf16.mxu0 %v7388_v30 }
 0x249   : > { %6749 = vmatmul.mubr.msk.f32.vlgmr.msra.gmra.mrb[2].mxu0 %vm404_vm0, %v8452_v31 }
 0x24a   : > { %7391 = vmatpush3.bf16.msra.mxu0 %v7388_v30  ;;  %6755 = vmatprep.mubr.msk.f32.mxu0 %vm404_vm0, %v8321_v2 }
 0x24b   : > { %7393 = vmatprep.subr.bf16.mxu0 %v8346_v9 }
 0x24d   : > { %6756 = vmatmul.mubr.msk.f32.vlgmr.msra.gmra.mrb[4].mxu0 %vm404_vm0, %v8328_v4 }
 0x24e   : > { %6758 = vmatprep.mubr.msk.f32.mxu0 %vm404_vm0, %v8333_v5  ;;  %7395 = vmatpush3.bf16.msra.mxu0 %v8346_v9 }
 0x24f   : > { %7397 = vmatprep.subr.bf16.mxu0 %v8354_v15 }
 0x251   : > { %6759 = vmatmul.mubr.msk.f32.gmra.mrb[6].mxu0 %vm404_vm0, %v8342_v6 }
 0x252   : > { %7399 = vmatpush3.bf16.msra.mxu0 %v8354_v15 }
 0x253   : > { %7401 = vmatprep.subr.bf16.mxu0 %v8362_v21 }
 0x31c   : > { %v6750_v32 = vpop.f32.mrb[2].mxu0 }
 0x31d   : > { %1116 = vst.msk [vmem:[%s8471_s28 + $0x8] sm:$0xff] %vm532_vm1, %v6750_v32  ;;  %v1106_v33 = vpop.f32.mrb[3].mxu0  ;;  %v6143_v32 = vld [vmem:[%s8372_s14 + $0x2] ss:$0 sm:$0xff] }
 0x31e   : > { %1115 = vst.msk [vmem:[%s8471_s28] sm:$0xff] %vm532_vm1, %v1106_v33  ;;  %v6141_v33 = vld [vmem:[%s8377_s16 + $0x2] ss:$0 sm:$0xff] }
 0x320   : > { %v6757_v34 = vpop.f32.mrb[4].mxu0 }
 0x321   : > { %v1186_v35 = vpop.f32.mrb[5].mxu0  ;;  %v1214_v49 = vmul.f32 %v6757_v34, %v6115_v37 }
 0x322   : > { %v1213_v43 = vmul.f32 %v6115_v37, %v1186_v35 }
 0x323   : > { %v1216_v51 = vmax.f32 %v1214_v49, 0.0 }
 0x324   : > { %v6760_v38 = vpop.f32.mrb[6].mxu0  ;;  %v1215_v48 = vmax.f32 %v1213_v43, 0.0 }
 0x325   : > { %v1226_v39 = vmul.f32 %v6760_v38, %v6117_v36  ;;  %v1196_v40 = vpop.f32.mrb[7].mxu0 }
 0x326   : > { %v1225_v44 = vmul.f32 %v6117_v36, %v1196_v40 }
 0x327   : > { %v1228_v47 = vmax.f32 %v1226_v39, 0.0 }
 0x328   : > { %v1227_v45 = vmax.f32 %v1225_v44, 0.0 }
 0x32a   : > { %6769 = vmatprep.mubr.msk.f32.mxu0 %vm532_vm1, %v1227_v45  ;;  %6791 = vmatprep.mubr.msk.f32.mxu1 %vm532_vm1, %v1227_v45 }
 0x32b   : > { %6770 = vmatmul.mubr.msk.f32.vlgmr.msra.gmra.mrb[8].mxu0 %vm532_vm1, %v1228_v47  ;;  %6792 = vmatmul.mubr.msk.f32.vlgmr.msra.gmra.mrb[8].mxu1 %vm532_vm1, %v1228_v47 }
 0x32c   : > { %7403 = vmatpush3.bf16.msra.mxu0 %v8362_v21  ;;  %6780 = vmatprep.mubr.msk.f32.mxu0 %vm532_vm1, %v1215_v48 }
 0x32d   : > { %7419 = vmatpush3.bf16.msra.mxu1 %v8365_v24  ;;  %6802 = vmatprep.mubr.msk.f32.mxu1 %vm532_vm1, %v1215_v48 }
 0x32e   : > { %7405 = vmatprep.subr.bf16.mxu0 %v8383_v41  ;;  %7421 = vmatprep.subr.bf16.mxu1 %v8385_v42 }
 0x330   : > { %7407 = vmatpush3.bf16.msra.mxu0 %v8383_v41 }
 0x331   : > { %7423 = vmatpush3.bf16.msra.mxu1 %v8385_v42  ;;  %7425 = vmatprep.subr.bf16.mxu0 %v8393_v46 }
 0x333   : > { %6781 = vmatmul.mubr.msk.f32.vlgmr.msra.gmra.mrb[8].mxu0 %vm532_vm1, %v1216_v51 }
 0x334   : > { %6803 = vmatmul.mubr.msk.f32.vlgmr.msra.gmra.mrb[8].mxu1 %vm532_vm1, %v1216_v51  ;;  %7427 = vmatpush3.bf16.msra.mxu0 %v8393_v46 }
 0x335   : > { %6813 = vmatprep.mubr.msk.f32.mxu0 %vm532_vm1, %v1227_v45  ;;  %7429 = vmatprep.subr.bf16.mxu0 %v8400_v50 }
 0x336   : > { %6831 = vmatprep.mubr.msk.f32.mxu1 %vm404_vm0, %v8427_v57 }
 0x338   : > { %7431 = vmatpush3.bf16.msra.mxu0 %v8400_v50 }
 0x339   : > { %7433 = vmatprep.subr.bf16.mxu0 %v8407_v53 }
 0x33b   : > { %6814 = vmatmul.mubr.msk.f32.vlgmr.msra.gmra.mrb[10].mxu0 %vm532_vm1, %v1228_v47 }
 0x33c   : > { %7435 = vmatpush3.bf16.msra.mxu0 %v8407_v53  ;;  %6824 = vmatprep.mubr.msk.f32.mxu0 %vm532_vm1, %v1215_v48 }
 0x33d   : > { %7437 = vmatprep.subr.bf16.mxu0 %v8411_v56 }
 0x340   : > { %7439 = vmatpush3.bf16.msra.mxu0 %v8411_v56 }
 0x341   : > { %7465 = vmatprep.subr.bf16.mxu0 %v8348_v12 }
 0x343   : > { %6825 = vmatmul.mubr.msk.f32.vlgmr.msra.gmra.mrb[10].mxu0 %vm532_vm1, %v1216_v51 }
 0x344   : > { %7467 = vmatpush3.bf16.msra.mxu0 %v8348_v12 }
 0x345   : > { %7469 = vmatprep.subr.bf16.mxu0 %v8356_v18 }
 0x348   : > { %7471 = vmatpush3.bf16.msra.mxu0 %v8356_v18 }
 0x349   : > { %7473 = vmatprep.subr.bf16.mxu0 %v8365_v24 }
 0x406   : > { %v6782_v52 = vpop.f32.mrb[8].mxu0 }
 0x407   : > { %v1400_v54 = vrot.slane %v6782_v52, 7  ;;  %v6804_v55 = vpop.f32.mrb[8].mxu1  ;;  %v1390_v58 = vpop.f32.mrb[9].mxu0 }
 0x408   : > { %v1399_v60 = vrot.slane %v1390_v58, 7  ;;  %v1552_v61 = vpop.f32.mrb[9].mxu1 }
 0x40a   : > { %v1401_v62 = vsel %vm699_vm2, %v1399_v60, %v1400_v54  ;;  %v1402_v63 = vsel %vm699_vm2, %v1400_v54, %v1399_v60 }
 0x40b   : > { %v1562_v0 = vadd.f32 %v6804_v55, %v1401_v62  ;;  %v1561_v1 = vadd.f32 %v1552_v61, %v1402_v63 }
 0x416   : > { %v6826_v3 = vpop.f32.mrb[10].mxu0 }
 0x417   : > { %v1722_v7 = vrot.slane %v6826_v3, 1  ;;  %v1712_v8 = vpop.f32.mrb[11].mxu0 }
 0x418   : > { %v1721_v10 = vrot.slane %v1712_v8, 1 }
 0x41a   : > { %v1723_v11 = vsel %vm1026_vm3, %v1721_v10, %v1722_v7  ;;  %v1724_v13 = vsel %vm1026_vm3, %v1722_v7, %v1721_v10 }
 0x41b   : > { %v1725_v14 = vadd.f32 %v1723_v11, %v1561_v1  ;;  %v1726_v16 = vadd.f32 %v1724_v13, %v1562_v0  ;;  %v6160_v11 = vld [vmem:[%s8306_s18 + $0x30] sm:$0xff]  ;;  %v6161_v13 = vld [vmem:[%s8306_s18 + $0x38] sm:$0xff] }
 0x41c   : > { %v7500_v19 = vpack.c.bf16 %v6161_v13, %v6160_v11 }
 0x41d   : > { %v1727_v22 = vadd.f32 %v1725_v14, %v8443_v20  ;;  %v1728_v23 = vadd.f32 %v1726_v16, %v8443_v20 }
 0x41f   : > { %v7440_v25 = vpack.c.bf16 %v1728_v23, %v1727_v22 }
 0x421   : > { %7441 = vmatprep.subr.bf16.mxu1 %v7440_v25 }
 0x422   : > { %7443 = vmatpush3.bf16.msra.mxu1 %v7440_v25 }
 0x423   : > { %7445 = vmatprep.subr.bf16.mxu1 %v7444_v26 }
 0x425   : > { %6832 = vmatmul.mubr.msk.f32.vlgmr.msra.gmra.mrb[10].mxu1 %vm404_vm0, %v8452_v31 }
 0x426   : > { %7447 = vmatpush3.bf16.msra.mxu1 %v7444_v26  ;;  %6838 = vmatprep.mubr.msk.f32.mxu1 %vm404_vm0, %v8321_v2 }
 0x427   : > { %7449 = vmatprep.subr.bf16.mxu1 %v8346_v9 }
 0x429   : > { %6839 = vmatmul.mubr.msk.f32.vlgmr.msra.gmra.mrb[12].mxu1 %vm404_vm0, %v8328_v4 }
 0x42a   : > { %6841 = vmatprep.mubr.msk.f32.mxu1 %vm404_vm0, %v8333_v5  ;;  %7451 = vmatpush3.bf16.msra.mxu1 %v8346_v9 }
 0x42b   : > { %7453 = vmatprep.subr.bf16.mxu1 %v8354_v15 }
 0x42d   : > { %6842 = vmatmul.mubr.msk.f32.gmra.mrb[14].mxu1 %vm404_vm0, %v8342_v6 }
 0x42e   : > { %7455 = vmatpush3.bf16.msra.mxu1 %v8354_v15 }
 0x42f   : > { %7457 = vmatprep.subr.bf16.mxu1 %v8362_v21 }
 0x4f8   : > { %v6833_v27 = vpop.f32.mrb[10].mxu1 }
 0x4f9   : > { %6133 = vst.msk [vmem:[%s8471_s28 + $0x18] sm:$0xff] %vm532_vm1, %v6833_v27  ;;  %v1795_v28 = vpop.f32.mrb[11].mxu1  ;;  %v6169_v27 = vld [vmem:[%s8372_s14 + $0x3] ss:$0 sm:$0xff] }
 0x4fa   : > { %6132 = vst.msk [vmem:[%s8471_s28 + $0x10] sm:$0xff] %vm532_vm1, %v1795_v28  ;;  %v6167_v28 = vld [vmem:[%s8377_s16 + $0x3] ss:$0 sm:$0xff] }
 0x4fc   : > { %v6840_v29 = vpop.f32.mrb[12].mxu1 }
 0x4fd   : > { %v1876_v30 = vpop.f32.mrb[13].mxu1  ;;  %v1904_v44 = vmul.f32 %v6840_v29, %v6141_v33 }
 0x4fe   : > { %v1903_v37 = vmul.f32 %v6141_v33, %v1876_v30 }
 0x4ff   : > { %v1906_v45 = vmax.f32 %v1904_v44, 0.0 }
 0x500   : > { %v6843_v34 = vpop.f32.mrb[14].mxu1  ;;  %v1905_v43 = vmax.f32 %v1903_v37, 0.0 }
 0x501   : > { %v1916_v35 = vmul.f32 %v6843_v34, %v6143_v32  ;;  %v1886_v36 = vpop.f32.mrb[15].mxu1 }
 0x502   : > { %v1915_v38 = vmul.f32 %v6143_v32, %v1886_v36 }
 0x503   : > { %v1918_v40 = vmax.f32 %v1916_v35, 0.0 }
 0x504   : > { %v1917_v39 = vmax.f32 %v1915_v38, 0.0 }
 0x506   : > { %6852 = vmatprep.mubr.msk.f32.mxu1 %vm532_vm1, %v1917_v39  ;;  %6874 = vmatprep.mubr.msk.f32.mxu0 %vm532_vm1, %v1917_v39 }
 0x507   : > { %6853 = vmatmul.mubr.msk.f32.vlgmr.msra.gmra.mrb[16].mxu1 %vm532_vm1, %v1918_v40  ;;  %6875 = vmatmul.mubr.msk.f32.vlgmr.msra.gmra.mrb[12].mxu0 %vm532_vm1, %v1918_v40 }
 0x508   : > { %7459 = vmatpush3.bf16.msra.mxu1 %v8362_v21  ;;  %6863 = vmatprep.mubr.msk.f32.mxu1 %vm532_vm1, %v1905_v43 }
 0x509   : > { %7475 = vmatpush3.bf16.msra.mxu0 %v8365_v24  ;;  %6885 = vmatprep.mubr.msk.f32.mxu0 %vm532_vm1, %v1905_v43 }
 0x50a   : > { %7461 = vmatprep.subr.bf16.mxu1 %v8383_v41  ;;  %7477 = vmatprep.subr.bf16.mxu0 %v8385_v42 }
 0x50c   : > { %7463 = vmatpush3.bf16.msra.mxu1 %v8383_v41 }
 0x50d   : > { %7479 = vmatpush3.bf16.msra.mxu0 %v8385_v42  ;;  %7481 = vmatprep.subr.bf16.mxu1 %v8393_v46 }
 0x50f   : > { %6864 = vmatmul.mubr.msk.f32.vlgmr.msra.gmra.mrb[16].mxu1 %vm532_vm1, %v1906_v45 }
 0x510   : > { %6886 = vmatmul.mubr.msk.f32.vlgmr.msra.gmra.mrb[12].mxu0 %vm532_vm1, %v1906_v45  ;;  %7483 = vmatpush3.bf16.msra.mxu1 %v8393_v46 }
 0x511   : > { %6896 = vmatprep.mubr.msk.f32.mxu1 %vm532_vm1, %v1917_v39  ;;  %7485 = vmatprep.subr.bf16.mxu1 %v8400_v50 }
 0x512   : > { %6914 = vmatprep.mubr.msk.f32.mxu0 %vm404_vm0, %v8427_v57 }
 0x514   : > { %7487 = vmatpush3.bf16.msra.mxu1 %v8400_v50 }
 0x515   : > { %7489 = vmatprep.subr.bf16.mxu1 %v8407_v53 }
 0x517   : > { %6897 = vmatmul.mubr.msk.f32.vlgmr.msra.gmra.mrb[18].mxu1 %vm532_vm1, %v1918_v40 }
 0x518   : > { %7491 = vmatpush3.bf16.msra.mxu1 %v8407_v53  ;;  %6907 = vmatprep.mubr.msk.f32.mxu1 %vm532_vm1, %v1905_v43 }
 0x519   : > { %7493 = vmatprep.subr.bf16.mxu1 %v8411_v56 }
 0x51c   : > { %7495 = vmatpush3.bf16.msra.mxu1 %v8411_v56 }
 0x51d   : > { %7521 = vmatprep.subr.bf16.mxu1 %v8348_v12 }
 0x51f   : > { %6908 = vmatmul.mubr.msk.f32.vlgmr.msra.gmra.mrb[18].mxu1 %vm532_vm1, %v1906_v45 }
 0x520   : > { %7523 = vmatpush3.bf16.msra.mxu1 %v8348_v12 }
 0x521   : > { %7525 = vmatprep.subr.bf16.mxu1 %v8356_v18 }
 0x524   : > { %7527 = vmatpush3.bf16.msra.mxu1 %v8356_v18 }
 0x525   : > { %7529 = vmatprep.subr.bf16.mxu1 %v8365_v24 }
 0x5e2   : > { %v6865_v47 = vpop.f32.mrb[16].mxu1 }
 0x5e3   : > { %v2090_v48 = vrot.slane %v6865_v47, 7  ;;  %v6887_v49 = vpop.f32.mrb[12].mxu0  ;;  %v2080_v51 = vpop.f32.mrb[17].mxu1 }
 0x5e4   : > { %v2089_v52 = vrot.slane %v2080_v51, 7  ;;  %v2242_v54 = vpop.f32.mrb[13].mxu0 }
 0x5e6   : > { %v2091_v55 = vsel %vm699_vm2, %v2089_v52, %v2090_v48  ;;  %v2092_v58 = vsel %vm699_vm2, %v2090_v48, %v2089_v52 }
 0x5e7   : > { %v2252_v60 = vadd.f32 %v6887_v49, %v2091_v55  ;;  %v2251_v61 = vadd.f32 %v2242_v54, %v2092_v58 }
 0x5f2   : > { %v6909_v62 = vpop.f32.mrb[18].mxu1 }
 0x5f3   : > { %v2412_v63 = vrot.slane %v6909_v62, 1  ;;  %v2402_v0 = vpop.f32.mrb[19].mxu1 }
 0x5f4   : > { %v2411_v1 = vrot.slane %v2402_v0, 1  ;;  %v6186_v0 = vld [vmem:[%s8306_s18 + $0x40] sm:$0xff] }
 0x5f6   : > { %v2413_v3 = vsel %vm1026_vm3, %v2411_v1, %v2412_v63  ;;  %v2414_v7 = vsel %vm1026_vm3, %v2412_v63, %v2411_v1  ;;  %v6187_v1 = vld [vmem:[%s8306_s18 + $0x48] sm:$0xff] }
 0x5f7   : > { %v2415_v8 = vadd.f32 %v2413_v3, %v2251_v61  ;;  %v2416_v10 = vadd.f32 %v2414_v7, %v2252_v60 }
 0x5f9   : > { %v2417_v14 = vadd.f32 %v2415_v8, %v8443_v20  ;;  %v2418_v16 = vadd.f32 %v2416_v10, %v8443_v20  ;;  %v7556_v10 = vpack.c.bf16 %v6187_v1, %v6186_v0  ;;  %v4163_v1 = vld [vmem:[#allocation6 + $0x20] sm:$0xff] }
 0x5fb   : > { %v7496_v17 = vpack.c.bf16 %v2418_v16, %v2417_v14 }
 0x5fd   : > { %7497 = vmatprep.subr.bf16.mxu0 %v7496_v17 }
 0x5fe   : > { %7499 = vmatpush3.bf16.msra.mxu0 %v7496_v17  ;;  %v6195_v17 = vld [vmem:[%s8372_s14 + $0x4] ss:$0 sm:$0xff] }
 0x5ff   : > { %7501 = vmatprep.subr.bf16.mxu0 %v7500_v19 }
 0x601   : > { %6915 = vmatmul.mubr.msk.f32.vlgmr.msra.gmra.mrb[14].mxu0 %vm404_vm0, %v8452_v31 }
 0x602   : > { %7503 = vmatpush3.bf16.msra.mxu0 %v7500_v19  ;;  %6921 = vmatprep.mubr.msk.f32.mxu0 %vm404_vm0, %v8321_v2  ;;  %v6193_v19 = vld [vmem:[%s8377_s16 + $0x4] ss:$0 sm:$0xff] }
 0x603   : > { %7505 = vmatprep.subr.bf16.mxu0 %v8346_v9 }
 0x605   : > { %6922 = vmatmul.mubr.msk.f32.vlgmr.msra.gmra.mrb[16].mxu0 %vm404_vm0, %v8328_v4 }
 0x606   : > { %6924 = vmatprep.mubr.msk.f32.mxu0 %vm404_vm0, %v8333_v5  ;;  %7507 = vmatpush3.bf16.msra.mxu0 %v8346_v9 }
 0x607   : > { %7509 = vmatprep.subr.bf16.mxu0 %v8354_v15 }
 0x609   : > { %6925 = vmatmul.mubr.msk.f32.gmra.mrb[18].mxu0 %vm404_vm0, %v8342_v6 }
 0x60a   : > { %7511 = vmatpush3.bf16.msra.mxu0 %v8354_v15 }
 0x60b   : > { %7513 = vmatprep.subr.bf16.mxu0 %v8362_v21 }
 0x6d4   : > { %v6916_v22 = vpop.f32.mrb[14].mxu0 }
 0x6d5   : > { %6159 = vst.msk [vmem:[%s8471_s28 + $0x28] sm:$0xff] %vm532_vm1, %v6916_v22  ;;  %v2485_v23 = vpop.f32.mrb[15].mxu0 }
 0x6d6   : > { %6158 = vst.msk [vmem:[%s8471_s28 + $0x20] sm:$0xff] %vm532_vm1, %v2485_v23 }
 0x6d8   : > { %v6923_v25 = vpop.f32.mrb[16].mxu0 }
 0x6d9   : > { %v2566_v26 = vpop.f32.mrb[17].mxu0  ;;  %v2594_v38 = vmul.f32 %v6923_v25, %v6167_v28 }
 0x6da   : > { %v2593_v33 = vmul.f32 %v6167_v28, %v2566_v26 }
 0x6db   : > { %v2596_v39 = vmax.f32 %v2594_v38, 0.0 }
 0x6dc   : > { %v6926_v29 = vpop.f32.mrb[18].mxu0  ;;  %v2595_v37 = vmax.f32 %v2593_v33, 0.0 }
 0x6dd   : > { %v2606_v30 = vmul.f32 %v6926_v29, %v6169_v27  ;;  %v2576_v32 = vpop.f32.mrb[19].mxu0 }
 0x6de   : > { %v2605_v34 = vmul.f32 %v6169_v27, %v2576_v32 }
 0x6df   : > { %v2608_v36 = vmax.f32 %v2606_v30, 0.0 }
 0x6e0   : > { %v2607_v35 = vmax.f32 %v2605_v34, 0.0 }
 0x6e2   : > { %6935 = vmatprep.mubr.msk.f32.mxu0 %vm532_vm1, %v2607_v35  ;;  %6957 = vmatprep.mubr.msk.f32.mxu1 %vm532_vm1, %v2607_v35 }
 0x6e3   : > { %6936 = vmatmul.mubr.msk.f32.vlgmr.msra.gmra.mrb[20].mxu0 %vm532_vm1, %v2608_v36  ;;  %6958 = vmatmul.mubr.msk.f32.vlgmr.msra.gmra.mrb[20].mxu1 %vm532_vm1, %v2608_v36 }
 0x6e4   : > { %7515 = vmatpush3.bf16.msra.mxu0 %v8362_v21  ;;  %6946 = vmatprep.mubr.msk.f32.mxu0 %vm532_vm1, %v2595_v37 }
 0x6e5   : > { %7531 = vmatpush3.bf16.msra.mxu1 %v8365_v24  ;;  %6968 = vmatprep.mubr.msk.f32.mxu1 %vm532_vm1, %v2595_v37 }
 0x6e6   : > { %7517 = vmatprep.subr.bf16.mxu0 %v8383_v41  ;;  %7533 = vmatprep.subr.bf16.mxu1 %v8385_v42 }
 0x6e8   : > { %7519 = vmatpush3.bf16.msra.mxu0 %v8383_v41 }
 0x6e9   : > { %7535 = vmatpush3.bf16.msra.mxu1 %v8385_v42  ;;  %7537 = vmatprep.subr.bf16.mxu0 %v8393_v46 }
 0x6eb   : > { %6947 = vmatmul.mubr.msk.f32.vlgmr.msra.gmra.mrb[20].mxu0 %vm532_vm1, %v2596_v39 }
 0x6ec   : > { %6969 = vmatmul.mubr.msk.f32.vlgmr.msra.gmra.mrb[20].mxu1 %vm532_vm1, %v2596_v39  ;;  %7539 = vmatpush3.bf16.msra.mxu0 %v8393_v46 }
 0x6ed   : > { %6979 = vmatprep.mubr.msk.f32.mxu0 %vm532_vm1, %v2607_v35  ;;  %7541 = vmatprep.subr.bf16.mxu0 %v8400_v50 }
 0x6ee   : > { %6997 = vmatprep.mubr.msk.f32.mxu1 %vm404_vm0, %v8427_v57 }
 0x6f0   : > { %7543 = vmatpush3.bf16.msra.mxu0 %v8400_v50 }
 0x6f1   : > { %7545 = vmatprep.subr.bf16.mxu0 %v8407_v53 }
 0x6f3   : > { %6980 = vmatmul.mubr.msk.f32.vlgmr.msra.gmra.mrb[22].mxu0 %vm532_vm1, %v2608_v36 }
 0x6f4   : > { %7547 = vmatpush3.bf16.msra.mxu0 %v8407_v53  ;;  %6990 = vmatprep.mubr.msk.f32.mxu0 %vm532_vm1, %v2595_v37 }
 0x6f5   : > { %7549 = vmatprep.subr.bf16.mxu0 %v8411_v56 }
 0x6f8   : > { %7551 = vmatpush3.bf16.msra.mxu0 %v8411_v56 }
 0x6f9   : > { %7577 = vmatprep.subr.bf16.mxu0 %v8348_v12 }
 0x6fb   : > { %6991 = vmatmul.mubr.msk.f32.vlgmr.msra.gmra.mrb[22].mxu0 %vm532_vm1, %v2596_v39 }
 0x6fc   : > { %7579 = vmatpush3.bf16.msra.mxu0 %v8348_v12 }
 0x6fd   : > { %7581 = vmatprep.subr.bf16.mxu0 %v8356_v18 }
 0x700   : > { %7583 = vmatpush3.bf16.msra.mxu0 %v8356_v18 }
 0x701   : > { %7585 = vmatprep.subr.bf16.mxu0 %v8365_v24 }
 0x7be   : > { %v6948_v40 = vpop.f32.mrb[20].mxu0 }
 0x7bf   : > { %v2780_v43 = vrot.slane %v6948_v40, 7  ;;  %v6970_v44 = vpop.f32.mrb[20].mxu1  ;;  %v2770_v45 = vpop.f32.mrb[21].mxu0 }
 0x7c0   : > { %v2779_v47 = vrot.slane %v2770_v45, 7  ;;  %v2932_v48 = vpop.f32.mrb[21].mxu1  ;;  %v6213_v45 = vld [vmem:[%s8306_s18 + $0x58] sm:$0xff] }
 0x7c2   : > { %v2781_v49 = vsel %vm699_vm2, %v2779_v47, %v2780_v43  ;;  %v2782_v12 = vsel %vm699_vm2, %v2780_v43, %v2779_v47 }
 0x7c3   : > { %v2942_v51 = vadd.f32 %v6970_v44, %v2781_v49  ;;  %v2941_v52 = vadd.f32 %v2932_v48, %v2782_v12  ;;  %v6212_v44 = vld [vmem:[%s8306_s18 + $0x50] sm:$0xff] }
 0x7c4   : > { %v7612_v12 = vpack.c.bf16 %v6213_v45, %v6212_v44 }
 0x7ce   : > { %v6992_v54 = vpop.f32.mrb[22].mxu0 }
 0x7cf   : > { %v3102_v18 = vrot.slane %v6992_v54, 1  ;;  %v3092_v55 = vpop.f32.mrb[23].mxu0 }
 0x7d0   : > { %v3101_v58 = vrot.slane %v3092_v55, 1  ;;  %v4168_v55 = vld [vmem:[#allocation8 + $0x28] sm:$0xff] }
 0x7d2   : > { %v3103_v60 = vsel %vm1026_vm3, %v3101_v58, %v3102_v18  ;;  %v3104_v61 = vsel %vm1026_vm3, %v3102_v18, %v3101_v58  ;;  %v4167_v18 = vld [vmem:[#allocation8 + $0x20] sm:$0xff] }
 0x7d3   : > { %v3105_v62 = vadd.f32 %v3103_v60, %v2941_v52  ;;  %v3106_v63 = vadd.f32 %v3104_v61, %v2942_v51  ;;  %v3993_v51 = vld [vmem:[#allocation8] sm:$0xff]  ;;  %v3994_v52 = vld [vmem:[#allocation8 + $0x8] sm:$0xff]  ;;  %v8729_v58 = vpack.c.bf16 %v4168_v55, %v4167_v18  ;;  %v4170_v60 = vld [vmem:[#allocation8 + $0x38] sm:$0xff] }
 0x7d4   : > { %v8727_v54 = vpack.c.bf16 %v3994_v52, %v3993_v51 }
 0x7d5   : > { %v3107_v3 = vadd.f32 %v3105_v62, %v8443_v20  ;;  %v3108_v7 = vadd.f32 %v3106_v63, %v8443_v20  ;;  %v3989_v62 = vld [vmem:[#allocation6] sm:$0xff]  ;;  %v3990_v63 = vld [vmem:[#allocation6 + $0x8] sm:$0xff] }
 0x7d6   : > { %v8743_v0 = vpack.c.bf16 %v3990_v63, %v3989_v62  ;;  %v6238_v63 = vld [vmem:[%s8306_s18 + $0x60] sm:$0xff] }
 0x7d7   : > { %v7552_v8 = vpack.c.bf16 %v3108_v7, %v3107_v3  ;;  %v4164_v3 = vld [vmem:[#allocation6 + $0x28] sm:$0xff] }
 0x7d8   : > { %v8746_v7 = vpack.c.bf16 %v4164_v3, %v4163_v1  ;;  %v6239_v1 = vld [vmem:[%s8306_s18 + $0x68] sm:$0xff] }
 0x7d9   : > { %7553 = vmatprep.subr.bf16.mxu1 %v7552_v8 }
 0x7da   : > { %7555 = vmatpush3.bf16.msra.mxu1 %v7552_v8 }
 0x7db   : > { %7557 = vmatprep.subr.bf16.mxu1 %v7556_v10 }
 0x7dd   : > { %6998 = vmatmul.mubr.msk.f32.vlgmr.msra.gmra.mrb[22].mxu1 %vm404_vm0, %v8452_v31 }
 0x7de   : > { %7559 = vmatpush3.bf16.msra.mxu1 %v7556_v10  ;;  %7004 = vmatprep.mubr.msk.f32.mxu1 %vm404_vm0, %v8321_v2 }
 0x7df   : > { %7561 = vmatprep.subr.bf16.mxu1 %v8346_v9 }
 0x7e1   : > { %7005 = vmatmul.mubr.msk.f32.vlgmr.msra.gmra.mrb[24].mxu1 %vm404_vm0, %v8328_v4 }
 0x7e2   : > { %7007 = vmatprep.mubr.msk.f32.mxu1 %vm404_vm0, %v8333_v5  ;;  %7563 = vmatpush3.bf16.msra.mxu1 %v8346_v9 }
 0x7e3   : > { %7565 = vmatprep.subr.bf16.mxu1 %v8354_v15 }
 0x7e5   : > { %7008 = vmatmul.mubr.msk.f32.gmra.mrb[26].mxu1 %vm404_vm0, %v8342_v6 }
 0x7e6   : > { %7567 = vmatpush3.bf16.msra.mxu1 %v8354_v15 }
 0x7e7   : > { %7569 = vmatprep.subr.bf16.mxu1 %v8362_v21 }
 0x8b0   : > { %v6999_v11 = vpop.f32.mrb[22].mxu1 }
 0x8b1   : > { %6185 = vst.msk [vmem:[%s8471_s28 + $0x38] sm:$0xff] %vm532_vm1, %v6999_v11  ;;  %v3175_v13 = vpop.f32.mrb[23].mxu1 }
 0x8b2   : > { %6184 = vst.msk [vmem:[%s8471_s28 + $0x30] sm:$0xff] %vm532_vm1, %v3175_v13 }
 0x8b4   : > { %v7006_v14 = vpop.f32.mrb[24].mxu1 }
 0x8b5   : > { %v3256_v16 = vpop.f32.mrb[25].mxu1  ;;  %v3284_v29 = vmul.f32 %v7006_v14, %v6193_v19  ;;  %v6221_v14 = vld [vmem:[%s8372_s14 + $0x5] ss:$0 sm:$0xff] }
 0x8b6   : > { %v3283_v25 = vmul.f32 %v6193_v19, %v3256_v16  ;;  %v6219_v16 = vld [vmem:[%s8377_s16 + $0x5] ss:$0 sm:$0xff] }
 0x8b7   : > { %v3286_v30 = vmax.f32 %v3284_v29, 0.0 }
 0x8b8   : > { %v7009_v9 = vpop.f32.mrb[26].mxu1  ;;  %v3285_v15 = vmax.f32 %v3283_v25, 0.0  ;;  %v3991_v25 = vld [vmem:[#allocation6 + $0x10] sm:$0xff] }
 0x8b9   : > { %v3296_v22 = vmul.f32 %v7009_v9, %v6195_v17  ;;  %v3266_v23 = vpop.f32.mrb[27].mxu1 }
 0x8ba   : > { %v3295_v26 = vmul.f32 %v6195_v17, %v3266_v23 }
 0x8bb   : > { %v3298_v28 = vmax.f32 %v3296_v22, 0.0 }
 0x8bc   : > { %v3297_v27 = vmax.f32 %v3295_v26, 0.0  ;;  %v3992_v26 = vld [vmem:[#allocation6 + $0x18] sm:$0xff] }
 0x8be   : > { %7018 = vmatprep.mubr.msk.f32.mxu1 %vm532_vm1, %v3297_v27  ;;  %7040 = vmatprep.mubr.msk.f32.mxu0 %vm532_vm1, %v3297_v27 }
 0x8bf   : > { %7019 = vmatmul.mubr.msk.f32.vlgmr.msra.gmra.mrb[28].mxu1 %vm532_vm1, %v3298_v28  ;;  %7041 = vmatmul.mubr.msk.f32.vlgmr.msra.gmra.mrb[24].mxu0 %vm532_vm1, %v3298_v28 }
 0x8c0   : > { %7571 = vmatpush3.bf16.msra.mxu1 %v8362_v21  ;;  %7029 = vmatprep.mubr.msk.f32.mxu1 %vm532_vm1, %v3285_v15 }
 0x8c1   : > { %7587 = vmatpush3.bf16.msra.mxu0 %v8365_v24  ;;  %7051 = vmatprep.mubr.msk.f32.mxu0 %vm532_vm1, %v3285_v15 }
 0x8c2   : > { %7573 = vmatprep.subr.bf16.mxu1 %v8383_v41  ;;  %7589 = vmatprep.subr.bf16.mxu0 %v8385_v42 }
 0x8c4   : > { %7575 = vmatpush3.bf16.msra.mxu1 %v8383_v41 }
 0x8c5   : > { %7591 = vmatpush3.bf16.msra.mxu0 %v8385_v42  ;;  %7593 = vmatprep.subr.bf16.mxu1 %v8393_v46 }
 0x8c7   : > { %7030 = vmatmul.mubr.msk.f32.vlgmr.msra.gmra.mrb[28].mxu1 %vm532_vm1, %v3286_v30 }
 0x8c8   : > { %7052 = vmatmul.mubr.msk.f32.vlgmr.msra.gmra.mrb[24].mxu0 %vm532_vm1, %v3286_v30  ;;  %7595 = vmatpush3.bf16.msra.mxu1 %v8393_v46 }
 0x8c9   : > { %7062 = vmatprep.mubr.msk.f32.mxu1 %vm532_vm1, %v3297_v27  ;;  %7597 = vmatprep.subr.bf16.mxu1 %v8400_v50  ;;  %v4165_v27 = vld [vmem:[#allocation6 + $0x30] sm:$0xff] }
 0x8ca   : > { %7080 = vmatprep.mubr.msk.f32.mxu0 %vm404_vm0, %v8427_v57 }
 0x8cc   : > { %7599 = vmatpush3.bf16.msra.mxu1 %v8400_v50 }
 0x8cd   : > { %7601 = vmatprep.subr.bf16.mxu1 %v8407_v53 }
 0x8cf   : > { %7063 = vmatmul.mubr.msk.f32.vlgmr.msra.gmra.mrb[30].mxu1 %vm532_vm1, %v3298_v28  ;;  %v4166_v28 = vld [vmem:[#allocation6 + $0x38] sm:$0xff] }
 0x8d0   : > { %7603 = vmatpush3.bf16.msra.mxu1 %v8407_v53  ;;  %7073 = vmatprep.mubr.msk.f32.mxu1 %vm532_vm1, %v3285_v15 }
 0x8d1   : > { %7605 = vmatprep.subr.bf16.mxu1 %v8411_v56 }
 0x8d4   : > { %7607 = vmatpush3.bf16.msra.mxu1 %v8411_v56 }
 0x8d5   : > { %7633 = vmatprep.subr.bf16.mxu1 %v8729_v58 }
 0x8d7   : > { %7074 = vmatmul.mubr.msk.f32.vlgmr.msra.gmra.mrb[30].mxu1 %vm532_vm1, %v3286_v30 }
 0x8d8   : > { %7635 = vmatpush3.bf16.msra.mxu1 %v8729_v58 }
 0x99a   : > { %v7031_v21 = vpop.f32.mrb[28].mxu1 }
 0x99b   : > { %v3470_v24 = vrot.slane %v7031_v21, 7  ;;  %v7053_v41 = vpop.f32.mrb[24].mxu0  ;;  %v3460_v42 = vpop.f32.mrb[29].mxu1  ;;  %v8757_v21 = vpack.c.bf16 %v3992_v26, %v3991_v25  ;;  %v6245_v25 = vld [vmem:[%s8377_s16 + $0x6] ss:$0 sm:$0xff] }
 0x99c   : > { %v3469_v46 = vrot.slane %v3460_v42, 7  ;;  %v3622_v50 = vpop.f32.mrb[25].mxu0  ;;  %v4328_v42 = vld [vmem:[#allocation8 + $0x48] sm:$0xff] }
 0x99e   : > { %v3471_v32 = vsel %vm699_vm2, %v3469_v46, %v3470_v24  ;;  %v3472_v53 = vsel %vm699_vm2, %v3470_v24, %v3469_v46  ;;  %v8759_v24 = vpack.c.bf16 %v4166_v28, %v4165_v27 }
 0x99f   : > { %v3632_v33 = vadd.f32 %v7053_v41, %v3471_v32  ;;  %v3631_v34 = vadd.f32 %v3622_v50, %v3472_v53  ;;  %v4327_v41 = vld [vmem:[#allocation8 + $0x40] sm:$0xff]  ;;  %v4329_v32 = vld [vmem:[#allocation8 + $0x50] sm:$0xff]  ;;  %v4330_v53 = vld [vmem:[#allocation8 + $0x58] sm:$0xff] }
 0x9a0   : > { %v8767_v50 = vpack.c.bf16 %v4328_v42, %v4327_v41 }
 0x9aa   : > { %v7075_v35 = vpop.f32.mrb[30].mxu1 }
 0x9ab   : > { %v3792_v56 = vrot.slane %v7075_v35, 1  ;;  %v3782_v36 = vpop.f32.mrb[31].mxu1  ;;  %v4323_v35 = vld [vmem:[#allocation6 + $0x40] sm:$0xff] }
 0x9ac   : > { %v3791_v37 = vrot.slane %v3782_v36, 1 }
 0x9ae   : > { %v3793_v38 = vsel %vm1026_vm3, %v3791_v37, %v3792_v56  ;;  %v3794_v39 = vsel %vm1026_vm3, %v3792_v56, %v3791_v37  ;;  %v4324_v56 = vld [vmem:[#allocation6 + $0x48] sm:$0xff]  ;;  %v4325_v37 = vld [vmem:[#allocation6 + $0x50] sm:$0xff] }
 0x9af   : > { %v3795_v40 = vadd.f32 %v3793_v38, %v3631_v34  ;;  %v3796_v43 = vadd.f32 %v3794_v39, %v3632_v33  ;;  %v8774_v34 = vpack.c.bf16 %v4330_v53, %v4329_v32  ;;  %v8781_v36 = vpack.c.bf16 %v4324_v56, %v4323_v35  ;;  %v4326_v38 = vld [vmem:[#allocation6 + $0x58] sm:$0xff]  ;;  %v8874_v53 = vld [vmem:[%s9028_s4] sm:$0xff] }
 0x9b0   : > { %v8787_v39 = vpack.c.bf16 %v4326_v38, %v4325_v37 }
 0x9b1   : > { %v3797_v47 = vadd.f32 %v3795_v40, %v8443_v20  ;;  %v3798_v48 = vadd.f32 %v3796_v43, %v8443_v20 }
 0x9b3   : > { %v7608_v49 = vpack.c.bf16 %v3798_v48, %v3797_v47 }
 0x9b5   : > { %7609 = vmatprep.subr.bf16.mxu0 %v7608_v49 }
 0x9b6   : > { %7611 = vmatpush3.bf16.msra.mxu0 %v7608_v49 }
 0x9b7   : > { %7613 = vmatprep.subr.bf16.mxu0 %v7612_v12 }
 0x9b9   : > { %7081 = vmatmul.mubr.msk.f32.vlgmr.msra.gmra.mrb[26].mxu0 %vm404_vm0, %v8452_v31 }
 0x9ba   : > { %7615 = vmatpush3.bf16.msra.mxu0 %v7612_v12  ;;  %7087 = vmatprep.mubr.msk.f32.mxu0 %vm404_vm0, %v8321_v2  ;;  %v3995_v2 = vld [vmem:[#allocation8 + $0x10] sm:$0xff] }
 0x9bb   : > { %7617 = vmatprep.subr.bf16.mxu0 %v8727_v54 }
 0x9bd   : > { %7088 = vmatmul.mubr.msk.f32.vlgmr.msra.gmra.mrb[28].mxu0 %vm404_vm0, %v8328_v4  ;;  %v3996_v4 = vld [vmem:[#allocation8 + $0x18] sm:$0xff] }
 0x9be   : > { %7090 = vmatprep.mubr.msk.f32.mxu0 %vm404_vm0, %v8333_v5  ;;  %7619 = vmatpush3.bf16.msra.mxu0 %v8727_v54  ;;  %v8735_v5 = vpack.c.bf16 %v3996_v4, %v3995_v2 }
 0x9c0   : > { %7621 = vmatprep.subr.bf16.mxu0 %v8735_v5 }
 0x9c1   : > { %7091 = vmatmul.mubr.msk.f32.gmra.mrb[30].mxu0 %vm404_vm0, %v8342_v6  ;;  %v4169_v6 = vld [vmem:[#allocation8 + $0x30] sm:$0xff] }
 0x9c2   : > { %v8737_v61 = vpack.c.bf16 %v4170_v60, %v4169_v6  ;;  %7623 = vmatpush3.bf16.msra.mxu0 %v8735_v5 }
 0x9c3   : > { %7625 = vmatprep.subr.bf16.mxu0 %v8743_v0 }
 0x9c4   : > { %7637 = vmatprep.subr.bf16.mxu1 %v8737_v61 }
 0x9c5   : > { %7639 = vmatpush3.bf16.msra.mxu1 %v8737_v61 }
 0x9c6   : > { %7641 = vmatprep.subr.bf16.mxu1 %v8746_v7 }
 0xa8c   : > { %v7082_v8 = vpop.f32.mrb[26].mxu0 }
 0xa8d   : > { %6211 = vst.msk [vmem:[%s8471_s28 + $0x48] sm:$0xff] %vm532_vm1, %v7082_v8  ;;  %v3865_v10 = vpop.f32.mrb[27].mxu0 }
 0xa8e   : > { %6210 = vst.msk [vmem:[%s8471_s28 + $0x40] sm:$0xff] %vm532_vm1, %v3865_v10 }
 0xa90   : > { %v7089_v11 = vpop.f32.mrb[28].mxu0 }
 0xa91   : > { %v3946_v13 = vpop.f32.mrb[29].mxu0  ;;  %v3974_v46 = vmul.f32 %v7089_v11, %v6219_v16  ;;  %v7668_v11 = vpack.c.bf16 %v6239_v1, %v6238_v63 }
 0xa92   : > { %v3973_v22 = vmul.f32 %v6219_v16, %v3946_v13  ;;  %v8817_v13 = vld [vmem:[%s9027_s3] sm:$0xff]  ;;  %v8841_v16 = vld [vmem:[%s9027_s3 + $0x18] sm:$0xff] }
 0xa93   : > { %v3976_v33 = vmax.f32 %v3974_v46, 0.0 }
 0xa94   : > { %v7092_v17 = vpop.f32.mrb[30].mxu0  ;;  %v3975_v30 = vmax.f32 %v3973_v22, 0.0 }
 0xa95   : > { %v3986_v19 = vmul.f32 %v7092_v17, %v6221_v14  ;;  %v3956_v9 = vpop.f32.mrb[31].mxu0 }
 0xa96   : > { %v3985_v23 = vmul.f32 %v6221_v14, %v3956_v9  ;;  %v8825_v14 = vld [vmem:[%s9027_s3 + $0x8] sm:$0xff] }
 0xa97   : > { %v3988_v29 = vmax.f32 %v3986_v19, 0.0 }
 0xa98   : > { %v3987_v15 = vmax.f32 %v3985_v23, 0.0  ;;  %v6247_v23 = vld [vmem:[%s8372_s14 + $0x6] ss:$0 sm:$0xff] }
 0xa9a   : > { %7101 = vmatprep.mubr.msk.f32.mxu0 %vm532_vm1, %v3987_v15  ;;  %7123 = vmatprep.mubr.msk.f32.mxu1 %vm532_vm1, %v3987_v15 }
 0xa9b   : > { %7102 = vmatmul.mubr.msk.f32.vlgmr.msra.gmra.mrb[32].mxu0 %vm532_vm1, %v3988_v29  ;;  %7124 = vmatmul.mubr.msk.f32.vlgmr.msra.gmra.mrb[32].mxu1 %vm532_vm1, %v3988_v29 }
 0xa9c   : > { %7627 = vmatpush3.bf16.msra.mxu0 %v8743_v0  ;;  %7112 = vmatprep.mubr.msk.f32.mxu0 %vm532_vm1, %v3975_v30 }
 0xa9d   : > { %7643 = vmatpush3.bf16.msra.mxu1 %v8746_v7  ;;  %7134 = vmatprep.mubr.msk.f32.mxu1 %vm532_vm1, %v3975_v30 }
 0xa9e   : > { %7629 = vmatprep.subr.bf16.mxu0 %v8757_v21  ;;  %7645 = vmatprep.subr.bf16.mxu1 %v8759_v24 }
 0xaa0   : > { %7631 = vmatpush3.bf16.msra.mxu0 %v8757_v21 }
 0xaa1   : > { %7647 = vmatpush3.bf16.msra.mxu1 %v8759_v24  ;;  %7649 = vmatprep.subr.bf16.mxu0 %v8767_v50 }
 0xaa3   : > { %7113 = vmatmul.mubr.msk.f32.vlgmr.msra.gmra.mrb[32].mxu0 %vm532_vm1, %v3976_v33 }
 0xaa4   : > { %7135 = vmatmul.mubr.msk.f32.vlgmr.msra.gmra.mrb[32].mxu1 %vm532_vm1, %v3976_v33  ;;  %7651 = vmatpush3.bf16.msra.mxu0 %v8767_v50 }
 0xaa5   : > { %7145 = vmatprep.mubr.msk.f32.mxu0 %vm532_vm1, %v3987_v15  ;;  %7653 = vmatprep.subr.bf16.mxu0 %v8774_v34 }
 0xaa6   : > { %7163 = vmatprep.mubr.msk.f32.mxu1 %vm404_vm0, %v8427_v57 }
 0xaa8   : > { %7655 = vmatpush3.bf16.msra.mxu0 %v8774_v34 }
 0xaa9   : > { %7657 = vmatprep.subr.bf16.mxu0 %v8781_v36 }
 0xaab   : > { %7146 = vmatmul.mubr.msk.f32.vlgmr.msra.gmra.mrb[34].mxu0 %vm532_vm1, %v3988_v29 }
 0xaac   : > { %7659 = vmatpush3.bf16.msra.mxu0 %v8781_v36  ;;  %7156 = vmatprep.mubr.msk.f32.mxu0 %vm532_vm1, %v3975_v30 }
 0xaad   : > { %7661 = vmatprep.subr.bf16.mxu0 %v8787_v39 }
 0xab0   : > { %7663 = vmatpush3.bf16.msra.mxu0 %v8787_v39 }
 0xab1   : > { %7689 = vmatprep.subr.bf16.mxu0 %v8729_v58 }
 0xab3   : > { %7157 = vmatmul.mubr.msk.f32.vlgmr.msra.gmra.mrb[34].mxu0 %vm532_vm1, %v3976_v33 }
 0xab4   : > { %7691 = vmatpush3.bf16.msra.mxu0 %v8729_v58 }
 0xab5   : > { %7693 = vmatprep.subr.bf16.mxu0 %v8737_v61 }
 0xab8   : > { %7695 = vmatpush3.bf16.msra.mxu0 %v8737_v61 }
 0xab9   : > { %7697 = vmatprep.subr.bf16.mxu0 %v8746_v7 }
 0xb76   : > { %v7114_v57 = vpop.f32.mrb[32].mxu0 }
 0xb77   : > { %v4160_v40 = vrot.slane %v7114_v57, 7  ;;  %v7136_v43 = vpop.f32.mrb[32].mxu1  ;;  %v4150_v44 = vpop.f32.mrb[33].mxu0 }
 0xb78   : > { %v4159_v45 = vrot.slane %v4150_v44, 7  ;;  %v4312_v47 = vpop.f32.mrb[33].mxu1 }
 0xb7a   : > { %v4161_v48 = vsel %vm699_vm2, %v4159_v45, %v4160_v40  ;;  %v4162_v49 = vsel %vm699_vm2, %v4160_v40, %v4159_v45 }
 0xb7b   : > { %v4322_v12 = vadd.f32 %v7136_v43, %v4161_v48  ;;  %v4321_v51 = vadd.f32 %v4312_v47, %v4162_v49 }
 0xb86   : > { %v7158_v52 = vpop.f32.mrb[34].mxu0 }
 0xb87   : > { %v4482_v18 = vrot.slane %v7158_v52, 1  ;;  %v4472_v55 = vpop.f32.mrb[35].mxu0 }
 0xb88   : > { %v4481_v2 = vrot.slane %v4472_v55, 1  ;;  %v6265_v55 = vld [vmem:[%s8306_s18 + $0x78] sm:$0xff] }
 0xb8a   : > { %v4483_v4 = vsel %vm1026_vm3, %v4481_v2, %v4482_v18  ;;  %v4484_v6 = vsel %vm1026_vm3, %v4482_v18, %v4481_v2  ;;  %v6264_v18 = vld [vmem:[%s8306_s18 + $0x70] sm:$0xff]  ;;  %s6299_s18 = sshll.u32 %s8140_s7, 11  ;;  %s8068_s7 = smov [#allocation9]  }
 0xb8b   : > { %v4485_v60 = vadd.f32 %v4483_v4, %v4321_v51  ;;  %v4486_v62 = vadd.f32 %v4484_v6, %v4322_v12  ;;  %s8974_s15 = scalar_lea.hbm %s9032_s8, %s6299_s18  ;;  %s7995_s19 = sshll.u32 %s8068_s7, 4  ;;  %s7996_s19 = int_to_ptr.vmem [resolvable:$false] %s7995_s19 }
 0xb8c   : > { %s7997_s26 = scalar_lea.vmem %s7996_s19, 4096 }
 0xb8d   : > { %v4487_v3 = vadd.f32 %v4485_v60, %v8443_v20  ;;  %v4488_v8 = vadd.f32 %v4486_v62, %v8443_v20  ;;  %v7724_v60 = vpack.c.bf16 %v6265_v55, %v6264_v18  ;;  %v8906_v62 = vld [vmem:[%s9028_s4 + $0x8] sm:$0xff] }
 0xb8f   : > { %v7664_v10 = vpack.c.bf16 %v4488_v8, %v4487_v3 }
 0xb91   : > { %7665 = vmatprep.subr.bf16.mxu1 %v7664_v10 }
 0xb92   : > { %7667 = vmatpush3.bf16.msra.mxu1 %v7664_v10  ;;  %v6273_v10 = vld [vmem:[%s8372_s14 + $0x7] ss:$0 sm:$0xff]  ;;  %s5962_s14 = sshll.u32 %s8471_s28, 4  ;;  %s8976_s14 = int_to_ptr.vmem [resolvable:$true] %s5962_s14 }
 0xb93   : > { %7669 = vmatprep.subr.bf16.mxu1 %v7668_v11  ;;  %s7991_s24 = scalar_lea.vmem %s8976_s14, 2048  ;;  %p7998_p9 = scmp.lt.s32.totalorder %s8976_s14, %s7996_s19 }
 0xb94   : > { %p7992_p0 = scmp.ne.s32.totalorder %s8976_s14, %s7991_s24  ;;  %p7999_p12 = scmp.lt.s32.totalorder %s7997_s26, %s7991_s24 }
 0xb95   : > { %7164 = vmatmul.mubr.msk.f32.vlgmr.msra.gmra.mrb[34].mxu1 %vm404_vm0, %v8452_v31  ;;  %v8832_v31 = vld [vmem:[%s9027_s3 + $0x10] sm:$0xff] }
 0xb96   : > { %7671 = vmatpush3.bf16.msra.mxu1 %v7668_v11  ;;  %7170 = vmatprep.mubr.msk.f32.mxu1 %vm404_vm0, %v8817_v13  ;;  %v6271_v11 = vld [vmem:[%s8377_s16 + $0x7] ss:$0 sm:$0xff]  ;;  %p7993_p3 = pnand %p7992_p0, %p9048_p2  ;;  %p8000_p1 = por %p7999_p12, %p7998_p9 }
 0xb97   : > { %7673 = vmatprep.subr.bf16.mxu1 %v8727_v54 }
 0xb98   : > { %p7994_p7 = pneg %p7993_p3 }
 0xb99   : > { %7171 = vmatmul.mubr.msk.f32.vlgmr.msra.gmra.mrb[36].mxu1 %vm404_vm0, %v8825_v14 }
 0xb9a   : > { %7173 = vmatprep.mubr.msk.f32.mxu1 %vm404_vm0, %v8832_v31  ;;  %7675 = vmatpush3.bf16.msra.mxu1 %v8727_v54  ;;  %p8001_p13 = pnand %p8000_p1, %p7994_p7 }
 0xb9b   : > { %7677 = vmatprep.subr.bf16.mxu1 %v8735_v5 }
 0xb9d   : > { %7174 = vmatmul.mubr.msk.f32.gmra.mrb[38].mxu1 %vm404_vm0, %v8841_v16 }
 0xb9e   : > { %7679 = vmatpush3.bf16.msra.mxu1 %v8735_v5 }
 0xb9f   : > { %7681 = vmatprep.subr.bf16.mxu1 %v8743_v0 }
 0xc68   : > { %v7165_v17 = vpop.f32.mrb[34].mxu1 }
 0xc69   : > { %6237 = vst.msk [vmem:[%s8471_s28 + $0x58] sm:$0xff] %vm532_vm1, %v7165_v17  ;;  %v4555_v19 = vpop.f32.mrb[35].mxu1 }
 0xc6a   : > { %6236 = vst.msk [vmem:[%s8471_s28 + $0x50] sm:$0xff] %vm532_vm1, %v4555_v19 }
 0xc6c   : > { %v7172_v9 = vpop.f32.mrb[36].mxu1 }
 0xc6d   : > { %v4636_v22 = vpop.f32.mrb[37].mxu1  ;;  %v4664_v46 = vmul.f32 %v7172_v9, %v6245_v25 }
 0xc6e   : > { %v4663_v15 = vmul.f32 %v6245_v25, %v4636_v22 }
 0xc6f   : > { %v4666_v32 = vmax.f32 %v4664_v46, 0.0 }
 0xc70   : > { %v7175_v26 = vpop.f32.mrb[38].mxu1  ;;  %v4665_v42 = vmax.f32 %v4663_v15, 0.0 }
 0xc71   : > { %v4676_v27 = vmul.f32 %v7175_v26, %v6247_v23  ;;  %v4646_v28 = vpop.f32.mrb[39].mxu1 }
 0xc72   : > { %v4675_v29 = vmul.f32 %v6247_v23, %v4646_v28 }
 0xc73   : > { %v4678_v41 = vmax.f32 %v4676_v27, 0.0 }
 0xc74   : > { %v4677_v30 = vmax.f32 %v4675_v29, 0.0 }
 0xc76   : > { %7184 = vmatprep.mubr.msk.f32.mxu1 %vm532_vm1, %v4677_v30  ;;  %7206 = vmatprep.mubr.msk.f32.mxu0 %vm532_vm1, %v4677_v30 }
 0xc77   : > { %7185 = vmatmul.mubr.msk.f32.vlgmr.msra.gmra.mrb[40].mxu1 %vm532_vm1, %v4678_v41  ;;  %7207 = vmatmul.mubr.msk.f32.vlgmr.msra.gmra.mrb[36].mxu0 %vm532_vm1, %v4678_v41 }
 0xc78   : > { %7683 = vmatpush3.bf16.msra.mxu1 %v8743_v0  ;;  %7195 = vmatprep.mubr.msk.f32.mxu1 %vm532_vm1, %v4665_v42 }
 0xc79   : > { %7699 = vmatpush3.bf16.msra.mxu0 %v8746_v7  ;;  %7217 = vmatprep.mubr.msk.f32.mxu0 %vm532_vm1, %v4665_v42 }
 0xc7a   : > { %7685 = vmatprep.subr.bf16.mxu1 %v8757_v21  ;;  %7701 = vmatprep.subr.bf16.mxu0 %v8759_v24 }
 0xc7c   : > { %7687 = vmatpush3.bf16.msra.mxu1 %v8757_v21 }
 0xc7d   : > { %7703 = vmatpush3.bf16.msra.mxu0 %v8759_v24  ;;  %7705 = vmatprep.subr.bf16.mxu1 %v8767_v50 }
 0xc7f   : > { %7196 = vmatmul.mubr.msk.f32.vlgmr.msra.gmra.mrb[40].mxu1 %vm532_vm1, %v4666_v32 }
 0xc80   : > { %7218 = vmatmul.mubr.msk.f32.vlgmr.msra.gmra.mrb[36].mxu0 %vm532_vm1, %v4666_v32  ;;  %7707 = vmatpush3.bf16.msra.mxu1 %v8767_v50 }
 0xc81   : > { %7228 = vmatprep.mubr.msk.f32.mxu1 %vm532_vm1, %v4677_v30  ;;  %7709 = vmatprep.subr.bf16.mxu1 %v8774_v34 }
 0xc82   : > { %7246 = vmatprep.mubr.msk.f32.mxu0 %vm404_vm0, %v8874_v53 }
 0xc84   : > { %7711 = vmatpush3.bf16.msra.mxu1 %v8774_v34 }
 0xc85   : > { %7713 = vmatprep.subr.bf16.mxu1 %v8781_v36 }
 0xc87   : > { %7229 = vmatmul.mubr.msk.f32.vlgmr.msra.gmra.mrb[42].mxu1 %vm532_vm1, %v4678_v41 }
 0xc88   : > { %7715 = vmatpush3.bf16.msra.mxu1 %v8781_v36  ;;  %7239 = vmatprep.mubr.msk.f32.mxu1 %vm532_vm1, %v4665_v42 }
 0xc89   : > { %7717 = vmatprep.subr.bf16.mxu1 %v8787_v39 }
 0xc8c   : > { %7719 = vmatpush3.bf16.msra.mxu1 %v8787_v39 }
 0xc8d   : > { %7745 = vmatprep.subr.bf16.mxu1 %v8729_v58 }
 0xc8f   : > { %7240 = vmatmul.mubr.msk.f32.vlgmr.msra.gmra.mrb[42].mxu1 %vm532_vm1, %v4666_v32 }
 0xc90   : > { %7747 = vmatpush3.bf16.msra.mxu1 %v8729_v58 }
 0xc91   : > { %7749 = vmatprep.subr.bf16.mxu1 %v8737_v61 }
 0xc94   : > { %7751 = vmatpush3.bf16.msra.mxu1 %v8737_v61 }
 0xc95   : > { %7753 = vmatprep.subr.bf16.mxu1 %v8746_v7 }
 0xd52   : > { %v7197_v33 = vpop.f32.mrb[40].mxu1 }
 0xd53   : > { %v4850_v35 = vrot.slane %v7197_v33, 7  ;;  %v7219_v56 = vpop.f32.mrb[36].mxu0  ;;  %v4840_v37 = vpop.f32.mrb[41].mxu1 }
 0xd54   : > { %v4849_v38 = vrot.slane %v4840_v37, 7  ;;  %v5002_v57 = vpop.f32.mrb[37].mxu0 }
 0xd56   : > { %v4851_v40 = vsel %vm699_vm2, %v4849_v38, %v4850_v35  ;;  %v4852_v58 = vsel %vm699_vm2, %v4850_v35, %v4849_v38 }
 0xd57   : > { %v5012_v43 = vadd.f32 %v7219_v56, %v4851_v40  ;;  %v5011_v44 = vadd.f32 %v5002_v57, %v4852_v58 }
 0xd62   : > { %v7241_v45 = vpop.f32.mrb[42].mxu1 }
 0xd63   : > { %v5172_v61 = vrot.slane %v7241_v45, 1  ;;  %v5162_v47 = vpop.f32.mrb[43].mxu1 }
 0xd64   : > { %v5171_v48 = vrot.slane %v5162_v47, 1 }
 0xd66   : > { %v5173_v49 = vsel %vm1026_vm3, %v5171_v48, %v5172_v61  ;;  %v5174_v12 = vsel %vm1026_vm3, %v5172_v61, %v5171_v48 }
 0xd67   : > { %v5175_v51 = vadd.f32 %v5173_v49, %v5011_v44  ;;  %v5176_v52 = vadd.f32 %v5174_v12, %v5012_v43 }
 0xd69   : > { %v5177_v2 = vadd.f32 %v5175_v51, %v8443_v20  ;;  %v5178_v4 = vadd.f32 %v5176_v52, %v8443_v20 }
 0xd6b   : > { %v7720_v6 = vpack.c.bf16 %v5178_v4, %v5177_v2 }
 0xd6d   : > { %7721 = vmatprep.subr.bf16.mxu0 %v7720_v6 }
 0xd6e   : > { %7723 = vmatpush3.bf16.msra.mxu0 %v7720_v6 }
 0xd6f   : > { %7725 = vmatprep.subr.bf16.mxu0 %v7724_v60 }
 0xd71   : > { %7247 = vmatmul.mubr.msk.f32.vlgmr.msra.gmra.mrb[38].mxu0 %vm404_vm0, %v8906_v62 }
 0xd72   : > { %7727 = vmatpush3.bf16.msra.mxu0 %v7724_v60  ;;  %7253 = vmatprep.mubr.msk.f32.mxu0 %vm404_vm0, %v8817_v13 }
 0xd73   : > { %7729 = vmatprep.subr.bf16.mxu0 %v8727_v54 }
 0xd75   : > { %7254 = vmatmul.mubr.msk.f32.vlgmr.msra.gmra.mrb[40].mxu0 %vm404_vm0, %v8825_v14 }
 0xd76   : > { %7256 = vmatprep.mubr.msk.f32.mxu0 %vm404_vm0, %v8832_v31  ;;  %7731 = vmatpush3.bf16.msra.mxu0 %v8727_v54 }
 0xd77   : > { %7733 = vmatprep.subr.bf16.mxu0 %v8735_v5 }
 0xd79   : > { %7257 = vmatmul.mubr.msk.f32.gmra.mrb[42].mxu0 %vm404_vm0, %v8841_v16 }
 0xd7a   : > { %7735 = vmatpush3.bf16.msra.mxu0 %v8735_v5 }
 0xd7b   : > { %7737 = vmatprep.subr.bf16.mxu0 %v8743_v0 }
 0xe44   : > { %v7248_v63 = vpop.f32.mrb[38].mxu0 }
 0xe45   : > { %6263 = vst.msk [vmem:[%s8471_s28 + $0x68] sm:$0xff] %vm532_vm1, %v7248_v63  ;;  %v5245_v1 = vpop.f32.mrb[39].mxu0 }
 0xe46   : > { %6262 = vst.msk [vmem:[%s8471_s28 + $0x60] sm:$0xff] %vm532_vm1, %v5245_v1 }
 0xe48   : > { %v7255_v3 = vpop.f32.mrb[40].mxu0 }
 0xe49   : > { %v5326_v8 = vpop.f32.mrb[41].mxu0  ;;  %v5354_v9 = vmul.f32 %v7255_v3, %v6271_v11 }
 0xe4a   : > { %v5353_v31 = vmul.f32 %v6271_v11, %v5326_v8 }
 0xe4b   : > { %v5356_v22 = vmax.f32 %v5354_v9, 0.0 }
 0xe4c   : > { %v7258_v54 = vpop.f32.mrb[42].mxu0  ;;  %v5355_v5 = vmax.f32 %v5353_v31, 0.0 }
 0xe4d   : > { %v5366_v13 = vmul.f32 %v7258_v54, %v6273_v10  ;;  %v5336_v14 = vpop.f32.mrb[43].mxu0 }
 0xe4e   : > { %v5365_v17 = vmul.f32 %v6273_v10, %v5336_v14 }
 0xe4f   : > { %v5368_v19 = vmax.f32 %v5366_v13, 0.0 }
 0xe50   : > { %v5367_v16 = vmax.f32 %v5365_v17, 0.0 }
 0xe52   : > { %7267 = vmatprep.mubr.msk.f32.mxu0 %vm532_vm1, %v5367_v16  ;;  %7289 = vmatprep.mubr.msk.f32.mxu1 %vm532_vm1, %v5367_v16 }
 0xe53   : > { %7268 = vmatmul.mubr.msk.f32.vlgmr.msra.gmra.mrb[44].mxu0 %vm532_vm1, %v5368_v19  ;;  %7290 = vmatmul.mubr.msk.f32.vlgmr.msra.gmra.mrb[44].mxu1 %vm532_vm1, %v5368_v19 }
 0xe54   : > { %7739 = vmatpush3.bf16.msra.mxu0 %v8743_v0  ;;  %7278 = vmatprep.mubr.msk.f32.mxu0 %vm532_vm1, %v5355_v5 }
 0xe55   : > { %7755 = vmatpush3.bf16.msra.mxu1 %v8746_v7  ;;  %7300 = vmatprep.mubr.msk.f32.mxu1 %vm532_vm1, %v5355_v5 }
 0xe56   : > { %7741 = vmatprep.subr.bf16.mxu0 %v8757_v21  ;;  %7757 = vmatprep.subr.bf16.mxu1 %v8759_v24 }
 0xe58   : > { %7743 = vmatpush3.bf16.msra.mxu0 %v8757_v21 }
 0xe59   : > { %7759 = vmatpush3.bf16.msra.mxu1 %v8759_v24  ;;  %7761 = vmatprep.subr.bf16.mxu0 %v8767_v50 }
 0xe5b   : > { %7279 = vmatmul.mubr.msk.f32.vlgmr.msra.gmra.mrb[44].mxu0 %vm532_vm1, %v5356_v22 }
 0xe5c   : > { %7301 = vmatmul.mubr.msk.f32.vlgmr.msra.gmra.mrb[44].mxu1 %vm532_vm1, %v5356_v22  ;;  %7763 = vmatpush3.bf16.msra.mxu0 %v8767_v50 }
 0xe5d   : > { %7311 = vmatprep.mubr.msk.f32.mxu0 %vm532_vm1, %v5367_v16  ;;  %7765 = vmatprep.subr.bf16.mxu0 %v8774_v34 }
 0xe5e   : > { %7329 = vmatprep.mubr.msk.f32.mxu1 %vm404_vm0, %v8874_v53 }
 0xe60   : > { %7767 = vmatpush3.bf16.msra.mxu0 %v8774_v34 }
 0xe61   : > { %7769 = vmatprep.subr.bf16.mxu0 %v8781_v36 }
 0xe63   : > { %7312 = vmatmul.mubr.msk.f32.vlgmr.msra.gmra.mrb[46].mxu0 %vm532_vm1, %v5368_v19 }
 0xe64   : > { %7771 = vmatpush3.bf16.msra.mxu0 %v8781_v36  ;;  %7322 = vmatprep.mubr.msk.f32.mxu0 %vm532_vm1, %v5355_v5 }
 0xe65   : > { %7773 = vmatprep.subr.bf16.mxu0 %v8787_v39 }
 0xe68   : > { %7775 = vmatpush3.bf16.msra.mxu0 %v8787_v39 }
 0xe6b   : > { %7323 = vmatmul.mubr.msk.f32.vlgmr.msra.gmra.mrb[46].mxu0 %vm532_vm1, %v5356_v22 }
 0xf2e   : > { %v7280_v0 = vpop.f32.mrb[44].mxu0 }
 0xf2f   : > { %v5540_v7 = vrot.slane %v7280_v0, 7  ;;  %v7302_v21 = vpop.f32.mrb[44].mxu1  ;;  %v5530_v24 = vpop.f32.mrb[45].mxu0 }
 0xf30   : > { %v5539_v50 = vrot.slane %v5530_v24, 7  ;;  %v5692_v34 = vpop.f32.mrb[45].mxu1 }
 0xf32   : > { %v5541_v23 = vsel %vm699_vm2, %v5539_v50, %v5540_v7  ;;  %v5542_v36 = vsel %vm699_vm2, %v5540_v7, %v5539_v50 }
 0xf33   : > { %v5702_v25 = vadd.f32 %v7302_v21, %v5541_v23  ;;  %v5701_v26 = vadd.f32 %v5692_v34, %v5542_v36 }
 0xf3e   : > { %v7324_v27 = vpop.f32.mrb[46].mxu0 }
 0xf3f   : > { %v5862_v39 = vrot.slane %v7324_v27, 1  ;;  %v5852_v28 = vpop.f32.mrb[47].mxu0 }
 0xf40   : > { %v5861_v15 = vrot.slane %v5852_v28, 1 }
 0xf42   : > { %v5863_v29 = vsel %vm1026_vm3, %v5861_v15, %v5862_v39  ;;  %v5864_v30 = vsel %vm1026_vm3, %v5862_v39, %v5861_v15 }
 0xf43   : > { %v5865_v41 = vadd.f32 %v5863_v29, %v5701_v26  ;;  %v5866_v42 = vadd.f32 %v5864_v30, %v5702_v25 }
 0xf45   : > { %v5867_v46 = vadd.f32 %v5865_v41, %v8443_v20  ;;  %v5868_v32 = vadd.f32 %v5866_v42, %v8443_v20 }
 0xf47   : > { %v7776_v53 = vpack.c.bf16 %v5868_v32, %v5867_v46 }
 0xf49   : > { %7777 = vmatprep.subr.bf16.mxu1 %v7776_v53 }
 0xf4a   : > { %7779 = vmatpush3.bf16.msra.mxu1 %v7776_v53 }
 0xf4d   : > { %7330 = vmatmul.mubr.msk.f32.vlgmr.msra.gmra.mrb[46].mxu1 %vm404_vm0, %v8906_v62 }
0x1020   : > { %v7331_v59 = vpop.f32.mrb[46].mxu1 }
0x1021   : > { %6289 = vst.msk [vmem:[%s8471_s28 + $0x78] sm:$0xff] %vm532_vm1, %v7331_v59  ;;  %v5935_v20 = vpop.f32.mrb[47].mxu1 }
0x1022   : > { %6288 = vst.msk [vmem:[%s8471_s28 + $0x70] sm:$0xff] %vm532_vm1, %v5935_v20 }
0x1023   : > { %8004 = shalt.err (!%p8001_p13)
}
0x1024   : > { %s8005_s28 = scalar_lea.hbm %s8974_s15, 2048  ;;  %s8009_s11 = scalar_lea.hbm %s9032_s8, 4096 }
0x1025   : > { %p8006_p6 = scmp.ne.s32.totalorder %s8974_s15, %s8005_s28  ;;  %p8010_p5 = scmp.lt.u32.totalorder %s8974_s15, %s9032_s8 }
0x1026   : > { %p8011_p8 = scmp.lt.u32.totalorder %s8009_s11, %s8005_s28  ;;  %p8013_p0 = scmp.lt.u32.totalorder %s8005_s28, %s8974_s15 }
0x1027   : > { %p8007_p10 = pnand %p8006_p6, %p9048_p2 }
0x1028   : > { %p8012_p11 = por %p8011_p8, %p8010_p5 }
0x1029   : > { %p8008_p4 = pneg %p8007_p10 }
0x102a   : > { %p8014_p3 = por %p8013_p0, %p8012_p11 }
0x102c   : > { %p8015_p7 = pnand %p8014_p3, %p8008_p4 }
0x102e   : > { %8018 = shalt.err (!%p8015_p7)
}
0x102f   : > { %s8069_s12 = smov 128   ;;  %s8070_s24 = smov 8  }
0x1030   : > { %7838 = dma.vmem_to_hbm [thread:$0]  (%p9048_p2), %s8976_s14, 2048, %s8974_s15, %s5948_s20, %s8069_s12, %s8069_s12, %s8070_s24  }
0x1031 PF: > { %s5977_s7 = sand.u32 1, %s8049_s29   ;;  %p9049_p9 = scmp.ne.s32.totalorder %s9038_s13, 0 }
0x1032   : > { %p9050_p12 = scmp.ge.s32.totalorder %s8061_s10, 2  ;;  %s5978_s19 = scalar_lea.sflag [#allocation5], %s5977_s7 }
0x1034   : > { %p7852_p1 = pnand %p9050_p12, %p9049_p9 }
0x1036   : > { %8044 = dma.done.wait (!%p7852_p1), %s5978_s19, 2048  }
0x1037   : > { %8046 = vsyncadd (!%p7852_p1), %s5978_s19, 4294965248  ;;  %p23_p13 = scmp.ge.s32.totalorder %s8235_s17, 4   ;;  %s9051_s29 = smov %s8053_s30 }
0x1038   : > { %s9052_s30 = smov %s8057_s9  ;;  %s9053_s9 = smov %s8251_s22 }
0x1039   : > { %s9054_s10 = smov %s8235_s17  ;;  %25 = sbr.rel (!%p23_p13) target bundleno = 8 (0x8), region = 143 }
0x1040   :  { %5983 = vsyncpa [#allocation4], 1 }
0x1041   :  { %5985 = vsyncpa [#allocation4 + $0x1], 1 }
0x1042   :  { %5986 = vsyncpa [#allocation7], 1 }
0x1043   :  { %5987 = vsyncpa [#allocation5], 1 }
0x1044   :  { %5989 = vsyncpa [#allocation5 + $0x1], 1 }

</bundles_post_ra>
